<compile_context>
chip_gen: v7x
topology: tpu7x:2x2x1
jax: 0.10.0
libtpu: 0.0.40
codegen_flags: <defaults>
</compile_context>

<pallas_src>
import functools
import math

import jax
import jax.numpy as jnp
from jax import lax
from jax.experimental import pallas as pl
from jax.experimental.pallas import tpu as pltpu


# ---------------------------------------------------------------------------
# Fused kernel: grouped conv + BN + ReLU6 -> qkv -> attention -> fused tail
# ---------------------------------------------------------------------------
def _fused_kernel(p_ref, wbd_ref, sc_ref, sh_ref, wqkv_ref, bias_ref,
                  wtail_ref, btail_ref, o_ref, *, num_heads):
    # p_ref    : (1, N, 64*G) flattened 4x4 patches (tap-major, group on lanes)
    # wbd_ref  : (64*G, G)    block-diagonal grouped-conv weight (MXU matmul)
    # sc_ref   : (1, G)       folded BN scale
    # sh_ref   : (1, G)       folded conv-bias + BN shift
    # wqkv_ref : (G, 3*G)     qkv weight^T, attention scale folded into Q cols
    # bias_ref : (nH, N, N)   relative position bias
    # wtail_ref: (nH, hd, D)  fused (proj @ conv_out) weight, split per head
    # btail_ref: (1, D)       fused bias
    # o_ref    : (1, N, D)
    p = p_ref[0].astype(jnp.float32)                               # (N, 64G)

    # 1) grouped conv + BN + ReLU6, all on the MXU
    tok = jnp.dot(p, wbd_ref[...].astype(jnp.float32),
                  preferred_element_type=jnp.float32)              # (N, G)
    tok = tok * sc_ref[...].astype(jnp.float32) + sh_ref[...].astype(jnp.float32)
    tok = jnp.clip(tok, 0.0, 6.0)                                  # ReLU6

    N, C = tok.shape
    hd = C // num_heads

    # 2) qkv projection (scale already folded into the Q columns)
    qkv = jnp.dot(tok, wqkv_ref[...].astype(jnp.float32),
                  preferred_element_type=jnp.float32)              # (N, 3C)

    # 3) per-head attention; head outputs go straight into the fused
    #    proj . conv_out matmul (no lane-axis concatenate of heads).
    acc = None
    for h in range(num_heads):                                     # 2 or 4, unrolled
        qh = qkv[:, h * hd:(h + 1) * hd]
        kh = qkv[:, C + h * hd:C + (h + 1) * hd]
        vh = qkv[:, 2 * C + h * hd:2 * C + (h + 1) * hd]
        # q @ k^T without materializing a transpose
        s = lax.dot_general(qh, kh, (((1,), (1,)), ((), ())),
                            preferred_element_type=jnp.float32)    # (N, N)
        s = s + bias_ref[h].astype(jnp.float32)
        s = s - jnp.max(s, axis=-1, keepdims=True)
        e = jnp.exp(s)
        # exact reciprocal keeps 1e-3 parity with the f32 reference;
        # use approx=True in production (EUP slot, effectively free).
        attn = e * pl.reciprocal(jnp.sum(e, axis=-1, keepdims=True))
        oh = jnp.dot(attn, vh, preferred_element_type=jnp.float32)  # (N, hd)
        contrib = jnp.dot(oh, wtail_ref[h].astype(jnp.float32),
                          preferred_element_type=jnp.float32)       # (N, D)
        acc = contrib if acc is None else acc + contrib

    y = acc + btail_ref[...].astype(jnp.float32)
    o_ref[0] = y.astype(o_ref.dtype)


def fused_attention(patches, prep, *, N, G, dim, num_heads):
    B = patches.shape[0]
    hd = G // num_heads
    kern = functools.partial(_fused_kernel, num_heads=num_heads)
    return pl.pallas_call(
        kern,
        out_shape=jax.ShapeDtypeStruct((B, N, dim), jnp.float32),
        grid_spec=pltpu.PrefetchScalarGridSpec(
            num_scalar_prefetch=0,
            grid=(B,),
            in_specs=[
                pl.BlockSpec((1, N, 64 * G), lambda b: (b, 0, 0)),
                pl.BlockSpec((64 * G, G), lambda b: (0, 0)),
                pl.BlockSpec((1, G), lambda b: (0, 0)),
                pl.BlockSpec((1, G), lambda b: (0, 0)),
                pl.BlockSpec((G, 3 * G), lambda b: (0, 0)),
                pl.BlockSpec((num_heads, N, N), lambda b: (0, 0, 0)),
                pl.BlockSpec((num_heads, hd, dim), lambda b: (0, 0, 0)),
                pl.BlockSpec((1, dim), lambda b: (0, 0)),
            ],
            out_specs=pl.BlockSpec((1, N, dim), lambda b: (b, 0, 0)),
        ),
        compiler_params=pltpu.CompilerParams(
            dimension_semantics=("parallel",)),
    )(patches, prep["w_bd"], prep["bn_scale"], prep["bn_shift"],
      prep["wqkv_t"], prep["rel_bias"], prep["w_tail"], prep["b_tail"])


# ---------------------------------------------------------------------------
# One-time parameter preparation (hoisted out of the per-call hot path)
# ---------------------------------------------------------------------------
def _bilinear_matrix(n_in, n_out):
    """Interpolation matrix for 1-D bilinear resize with align_corners=True."""
    if n_in == 1:
        return jnp.ones((n_out, 1), jnp.float32)
    src = jnp.arange(n_out, dtype=jnp.float32) * (n_in - 1) / (n_out - 1)
    lo = jnp.clip(jnp.floor(src).astype(jnp.int32), 0, n_in - 2)
    frac = src - lo.astype(jnp.float32)
    rows = jnp.arange(n_out)
    U = jnp.zeros((n_out, n_in), jnp.float32)
    U = U.at[rows, lo].add(1.0 - frac)
    U = U.at[rows, lo + 1].add(frac)
    return U


def _relative_position_bias(table, wh, ww, num_heads):
    ch = jnp.arange(wh)
    cw = jnp.arange(ww)
    coords = jnp.stack(jnp.meshgrid(ch, cw, indexing="ij"))      # (2, wh, ww)
    cf = coords.reshape(2, -1)                                    # (2, N)
    rel = cf[:, :, None] - cf[:, None, :]                         # (2, N, N)
    rel = jnp.transpose(rel, (1, 2, 0))
    rel = rel.at[:, :, 0].add(wh - 1)
    rel = rel.at[:, :, 1].add(ww - 1)
    rel = rel.at[:, :, 0].multiply(2 * ww - 1)
    idx = rel.sum(-1).reshape(-1)
    N = wh * ww
    bias = table[idx].reshape(N, N, num_heads)
    return jnp.transpose(bias, (2, 0, 1)).astype(jnp.float32)     # (nH, N, N)


def prepare_params(params, H, W, eps=1e-5):
    """Precompute all weight slabs / bias tables (depends only on params + shapes)."""
    dim = params["wout"].shape[0]
    G = dim // 4
    ho, wo = H // 4, W // 4
    num_heads = 2 if G <= 64 else 4
    hd = G // num_heads
    scale = hd ** (-0.5)

    # grouped 4x4/s4 conv -> block-diagonal (64*G, G) MXU weight
    wk = jnp.transpose(params["conv_w"], (1, 2, 3, 0)).reshape(64, G)   # (tap, g)
    w_bd = (wk[:, :, None].astype(jnp.float32)
            * jnp.eye(G, dtype=jnp.float32)[None, :, :]).reshape(64 * G, G)

    # folded BatchNorm (eval mode)
    s = params["bn_gamma"] / jnp.sqrt(params["bn_var"] + eps)
    bn_scale = s.reshape(1, G).astype(jnp.float32)
    bn_shift = ((params["conv_b"] - params["bn_mean"]) * s
                + params["bn_beta"]).reshape(1, G).astype(jnp.float32)

    # qkv weight^T with the attention scale folded into the Q columns
    wqkv_t = jnp.transpose(params["wqkv"]).astype(jnp.float32)          # (G, 3G)
    wqkv_t = wqkv_t.at[:, :G].multiply(scale)

    # fuse proj Linear with the 1x1 conv_out into one (G, dim) weight
    wproj_t = jnp.transpose(params["wproj"]).astype(jnp.float32)        # (G, G)
    wout_t = jnp.transpose(params["wout"][:, :, 0, 0]).astype(jnp.float32)  # (G, dim)
    w_tail = (wproj_t @ wout_t).reshape(num_heads, hd, dim)
    b_tail = (params["bproj"].astype(jnp.float32) @ wout_t
              + params["bout"].astype(jnp.float32)).reshape(1, dim)

    rel_bias = _relative_position_bias(params["rel_table"], ho, wo, num_heads)

    return {
        "w_bd": w_bd, "bn_scale": bn_scale, "bn_shift": bn_shift,
        "wqkv_t": wqkv_t, "rel_bias": rel_bias,
        "w_tail": w_tail, "b_tail": b_tail,
        "U": _bilinear_matrix(ho, 4 * ho), "V": _bilinear_matrix(wo, 4 * wo),
    }


# ---------------------------------------------------------------------------
# Forward
# ---------------------------------------------------------------------------
def global_self_attention_v3(x, prep):
    """Full forward of GlobalSelfAttentionV3. x: (B, dim, H, W) -> (B, dim, H, W)."""
    B, dim, H, W = x.shape
    G = dim // 4
    ho, wo = H // 4, W // 4
    N = ho * wo
    num_heads = prep["rel_bias"].shape[0]

    # One-time layout prep of the activation into flattened 4x4 patches.
    # channel c = 4*g + ci ; H = 4*i + kh ; W = 4*j + kw   -> tap t = ci*16+kh*4+kw
    xr = x.reshape(B, G, 4, ho, 4, wo, 4)                       # (b,g,ci,i,kh,j,kw)
    patches = jnp.transpose(xr, (0, 3, 5, 2, 4, 6, 1)).reshape(B, N, 64 * G)

    y = fused_attention(patches, prep, N=N, G=G, dim=dim,
                        num_heads=num_heads)                    # (B, N, dim)

    # 4x bilinear upsample (align_corners=True) as separable matmuls + NCHW.
    y = y.reshape(B, ho, wo, dim)
    out = jnp.einsum("ip,bpqc->biqc", prep["U"], y)
    out = jnp.einsum("jq,biqc->bijc", prep["V"], out)
    return jnp.transpose(out, (0, 3, 1, 2))                     # NCHW


# ---------------------------------------------------------------------------
# Pure-JAX reference (no Pallas) for correctness check
# ---------------------------------------------------------------------------
def _reference_forward(x, params, eps=1e-5):
    B, dim, H, W = x.shape
    G = dim // 4
    z = lax.conv_general_dilated(
        x, params["conv_w"], (4, 4), "VALID",
        dimension_numbers=("NCHW", "OIHW", "NCHW"),
        feature_group_count=G)
    z = z + params["conv_b"][None, :, None, None]
    z = (z - params["bn_mean"][None, :, None, None]) / jnp.sqrt(
        params["bn_var"][None, :, None, None] + eps)
    z = z * params["bn_gamma"][None, :, None, None] + params["bn_beta"][None, :, None, None]
    z = jnp.clip(z, 0.0, 6.0)

    b, c, h, w = z.shape
    tok = jnp.transpose(z.reshape(b, c, h * w), (0, 2, 1))       # (B, N, C)
    num_heads = 2 if c <= 64 else 4
    hd = c // num_heads
    scale = hd ** (-0.5)

    qkv = tok @ jnp.transpose(params["wqkv"])
    qkv = qkv.reshape(b, h * w, 3, num_heads, hd).transpose(2, 0, 3, 1, 4)
    q, k, v = qkv[0], qkv[1], qkv[2]
    q = q * scale
    attn = jnp.einsum("bhnd,bhmd->bhnm", q, k)
    attn = attn + _relative_position_bias(params["rel_table"], h, w, num_heads)[None]
    attn = jax.nn.softmax(attn, axis=-1)
    o = jnp.einsum("bhnm,bhmd->bhnd", attn, v)
    o = o.transpose(0, 2, 1, 3).reshape(b, h * w, c)
    o = o @ jnp.transpose(params["wproj"]) + params["bproj"]
    img = o.reshape(b, h, w, c).transpose(0, 3, 1, 2)            # blc2bchw
    co = jnp.einsum("oc,bchw->bohw", params["wout"][:, :, 0, 0], img)
    co = co + params["bout"][None, :, None, None]
    U = _bilinear_matrix(h, 4 * h)
    V = _bilinear_matrix(w, 4 * w)
    up = jnp.einsum("ip,bcpq->bciq", U, co)
    up = jnp.einsum("jq,bciq->bcij", V, up)
    return up


if __name__ == "__main__":
    jax.config.update("jax_default_matmul_precision", "highest")

    key = jax.random.PRNGKey(0)
    keys = jax.random.split(key, 12)

    B, dim, H, W = 2, 32, 16, 16            # constructor: dim=32, h=16
    G = dim // 4                             # 8
    real_h = H // 4                          # 4
    num_heads = 2 if G <= 64 else 4
    table_len = (2 * real_h - 1) * (2 * real_h - 1)

    x = jax.random.normal(keys[0], (B, dim, H, W), dtype=jnp.float32)

    params = {
        # grouped conv (G, in/groups=4, 4, 4), fan_in = 4*4*4 = 64
        "conv_w": jax.random.uniform(keys[1], (G, 4, 4, 4), jnp.float32, -1 / 8, 1 / 8),
        "conv_b": jax.random.uniform(keys[2], (G,), jnp.float32, -1 / 8, 1 / 8),
        "bn_gamma": jax.random.uniform(keys[3], (G,), jnp.float32, 0.5, 1.5),
        "bn_beta": 0.1 * jax.random.normal(keys[4], (G,), jnp.float32),
        "bn_mean": 0.1 * jax.random.normal(keys[5], (G,), jnp.float32),
        "bn_var": jax.random.uniform(keys[6], (G,), jnp.float32, 0.5, 1.5),
        "rel_table": 0.02 * jax.random.normal(keys[7], (table_len, num_heads), jnp.float32),
        "wqkv": jax.random.uniform(keys[8], (3 * G, G), jnp.float32,
                                   -1 / math.sqrt(G), 1 / math.sqrt(G)),
        "wproj": jax.random.uniform(keys[9], (G, G), jnp.float32,
                                    -1 / math.sqrt(G), 1 / math.sqrt(G)),
        "bproj": jax.random.uniform(keys[10], (G,), jnp.float32,
                                    -1 / math.sqrt(G), 1 / math.sqrt(G)),
        "wout": jax.random.uniform(keys[11], (dim, G, 1, 1), jnp.float32,
                                   -1 / math.sqrt(G), 1 / math.sqrt(G)),
        "bout": 0.1 * jax.random.normal(jax.random.PRNGKey(42), (dim,), jnp.float32),
    }

    # One-time prep (fused/transposed weights, bias table, bilinear matrices).
    prep = jax.tree_util.tree_map(jnp.asarray, prepare_params(params, H, W))

    fwd = jax.jit(global_self_attention_v3)
    out = jax.block_until_ready(fwd(x, prep))

    ref = _reference_forward(x, params)
    assert out.shape == (B, dim, H, W), f"bad output shape {out.shape}"
    assert jnp.allclose(out, ref, atol=1e-3, rtol=1e-3), "mismatch vs reference"

    print("KERNEL_OK")
</pallas_src>

<mosaic_0001>
module attributes {stable_mosaic.version = 11 : i64} {
  func.func @_fused_kernel(%arg0: i32, %arg1: memref<1x16x512xf32, #tpu.memory_space<vmem>>, %arg2: memref<512x8xf32, #tpu.memory_space<vmem>>, %arg3: memref<1x8xf32, #tpu.memory_space<vmem>>, %arg4: memref<1x8xf32, #tpu.memory_space<vmem>>, %arg5: memref<8x24xf32, #tpu.memory_space<vmem>>, %arg6: memref<2x16x16xf32, #tpu.memory_space<vmem>>, %arg7: memref<2x4x32xf32, #tpu.memory_space<vmem>>, %arg8: memref<1x32xf32, #tpu.memory_space<vmem>>, %arg9: memref<1x16x32xf32, #tpu.memory_space<vmem>>) attributes {dimension_semantics = [#tpu.dimension_semantics<parallel>], iteration_bounds = array<i64: 2>, scalar_prefetch = 0 : i64, scratch_operands = 0 : i64, tpu.core_type = #tpu.core_type<tc>, window_params = [{transform_indices = @transform_0, window_bounds = array<i64: 1, 16, 512>}, {pipeline_mode = #tpu.pipeline_mode<synchronous>, transform_indices = @transform_1, window_bounds = array<i64: 512, 8>}, {pipeline_mode = #tpu.pipeline_mode<synchronous>, transform_indices = @transform_2, window_bounds = array<i64: 1, 8>}, {pipeline_mode = #tpu.pipeline_mode<synchronous>, transform_indices = @transform_3, window_bounds = array<i64: 1, 8>}, {pipeline_mode = #tpu.pipeline_mode<synchronous>, transform_indices = @transform_4, window_bounds = array<i64: 8, 24>}, {pipeline_mode = #tpu.pipeline_mode<synchronous>, transform_indices = @transform_5, window_bounds = array<i64: 2, 16, 16>}, {pipeline_mode = #tpu.pipeline_mode<synchronous>, transform_indices = @transform_6, window_bounds = array<i64: 2, 4, 32>}, {pipeline_mode = #tpu.pipeline_mode<synchronous>, transform_indices = @transform_7, window_bounds = array<i64: 1, 32>}, {transform_indices = @transform_8, window_bounds = array<i64: 1, 16, 32>}]} {
    %c0 = arith.constant 0 : index
    %c0_0 = arith.constant 0 : index
    %c0_1 = arith.constant 0 : index
    %0 = vector.load %arg1[%c0, %c0_0, %c0_1] : memref<1x16x512xf32, #tpu.memory_space<vmem>>, vector<1x16x512xf32>
    %1 = vector.shape_cast %0 : vector<1x16x512xf32> to vector<16x512xf32>
    %c0_2 = arith.constant 0 : index
    %c0_3 = arith.constant 0 : index
    %2 = vector.load %arg2[%c0_2, %c0_3] : memref<512x8xf32, #tpu.memory_space<vmem>>, vector<512x8xf32>
    %cst = arith.constant dense<0.000000e+00> : vector<16x8xf32>
    %3 = tpu.matmul %1, %2, %cst {dimension_numbers = #tpu.dot_dimension_numbers<[1], [0], [0], [1], [0, 0, 1, 1], [], []>, precision = #tpu.contract_precision<fp32>} : vector<16x512xf32>, vector<512x8xf32>, vector<16x8xf32> -> vector<16x8xf32>
    %c0_4 = arith.constant 0 : index
    %c0_5 = arith.constant 0 : index
    %4 = vector.load %arg3[%c0_4, %c0_5] : memref<1x8xf32, #tpu.memory_space<vmem>>, vector<1x8xf32>
    %5 = vector.broadcast %4 : vector<1x8xf32> to vector<16x8xf32>
    %6 = arith.mulf %3, %5 : vector<16x8xf32>
    %c0_6 = arith.constant 0 : index
    %c0_7 = arith.constant 0 : index
    %7 = vector.load %arg4[%c0_6, %c0_7] : memref<1x8xf32, #tpu.memory_space<vmem>>, vector<1x8xf32>
    %8 = vector.broadcast %7 : vector<1x8xf32> to vector<16x8xf32>
    %9 = arith.addf %6, %8 : vector<16x8xf32>
    %cst_8 = arith.constant 0.000000e+00 : f32
    %cst_9 = arith.constant 6.000000e+00 : f32
    %10 = vector.broadcast %cst_8 : f32 to vector<16x8xf32>
    %11 = arith.maximumf %10, %9 : vector<16x8xf32>
    %12 = vector.broadcast %cst_9 : f32 to vector<16x8xf32>
    %13 = arith.minimumf %12, %11 : vector<16x8xf32>
    %c0_10 = arith.constant 0 : index
    %c0_11 = arith.constant 0 : index
    %14 = vector.load %arg5[%c0_10, %c0_11] : memref<8x24xf32, #tpu.memory_space<vmem>>, vector<8x24xf32>
    %cst_12 = arith.constant dense<0.000000e+00> : vector<16x24xf32>
    %15 = tpu.matmul %13, %14, %cst_12 {dimension_numbers = #tpu.dot_dimension_numbers<[1], [0], [0], [1], [0, 0, 1, 1], [], []>, precision = #tpu.contract_precision<fp32>} : vector<16x8xf32>, vector<8x24xf32>, vector<16x24xf32> -> vector<16x24xf32>
    %16 = vector.extract_strided_slice %15 {offsets = [0, 0], sizes = [16, 4], strides = [1, 1]} : vector<16x24xf32> to vector<16x4xf32>
    %17 = vector.extract_strided_slice %15 {offsets = [0, 8], sizes = [16, 4], strides = [1, 1]} : vector<16x24xf32> to vector<16x4xf32>
    %18 = vector.extract_strided_slice %15 {offsets = [0, 16], sizes = [16, 4], strides = [1, 1]} : vector<16x24xf32> to vector<16x4xf32>
    %cst_13 = arith.constant dense<0.000000e+00> : vector<16x16xf32>
    %19 = tpu.matmul %16, %17, %cst_13 {dimension_numbers = #tpu.dot_dimension_numbers<[1], [1], [0], [0], [0, 0, 1, 0], [], []>, precision = #tpu.contract_precision<fp32>} : vector<16x4xf32>, vector<16x4xf32>, vector<16x16xf32> -> vector<16x16xf32>
    %c0_14 = arith.constant 0 : index
    %c0_15 = arith.constant 0 : index
    %c0_16 = arith.constant 0 : index
    %20 = vector.load %arg6[%c0_14, %c0_15, %c0_16] : memref<2x16x16xf32, #tpu.memory_space<vmem>>, vector<1x16x16xf32>
    %21 = vector.shape_cast %20 : vector<1x16x16xf32> to vector<16x16xf32>
    %22 = arith.addf %19, %21 : vector<16x16xf32>
    %cst_17 = arith.constant dense<0xFF800000> : vector<16xf32>
    %23 = vector.multi_reduction <maximumf>, %22, %cst_17 [1] : vector<16x16xf32> to vector<16xf32>
    %24 = vector.shape_cast %23 : vector<16xf32> to vector<16x1xf32>
    %25 = vector.broadcast %24 : vector<16x1xf32> to vector<16x16xf32>
    %26 = arith.subf %22, %25 : vector<16x16xf32>
    %27 = math.exp %26 : vector<16x16xf32>
    %cst_18 = arith.constant dense<0.000000e+00> : vector<16xf32>
    %28 = vector.multi_reduction <add>, %27, %cst_18 [1] : vector<16x16xf32> to vector<16xf32>
    %29 = vector.shape_cast %28 : vector<16xf32> to vector<16x1xf32>
    %30 = tpu.reciprocal %29 : vector<16x1xf32> -> vector<16x1xf32>
    %31 = vector.broadcast %30 : vector<16x1xf32> to vector<16x16xf32>
    %32 = arith.mulf %27, %31 : vector<16x16xf32>
    %cst_19 = arith.constant dense<0.000000e+00> : vector<16x4xf32>
    %33 = tpu.matmul %32, %18, %cst_19 {dimension_numbers = #tpu.dot_dimension_numbers<[1], [0], [0], [1], [0, 0, 1, 1], [], []>, precision = #tpu.contract_precision<fp32>} : vector<16x16xf32>, vector<16x4xf32>, vector<16x4xf32> -> vector<16x4xf32>
    %c0_20 = arith.constant 0 : index
    %c0_21 = arith.constant 0 : index
    %c0_22 = arith.constant 0 : index
    %34 = vector.load %arg7[%c0_20, %c0_21, %c0_22] : memref<2x4x32xf32, #tpu.memory_space<vmem>>, vector<1x4x32xf32>
    %35 = vector.shape_cast %34 : vector<1x4x32xf32> to vector<4x32xf32>
    %cst_23 = arith.constant dense<0.000000e+00> : vector<16x32xf32>
    %36 = tpu.matmul %33, %35, %cst_23 {dimension_numbers = #tpu.dot_dimension_numbers<[1], [0], [0], [1], [0, 0, 1, 1], [], []>, precision = #tpu.contract_precision<fp32>} : vector<16x4xf32>, vector<4x32xf32>, vector<16x32xf32> -> vector<16x32xf32>
    %37 = vector.extract_strided_slice %15 {offsets = [0, 4], sizes = [16, 4], strides = [1, 1]} : vector<16x24xf32> to vector<16x4xf32>
    %38 = vector.extract_strided_slice %15 {offsets = [0, 12], sizes = [16, 4], strides = [1, 1]} : vector<16x24xf32> to vector<16x4xf32>
    %39 = vector.extract_strided_slice %15 {offsets = [0, 20], sizes = [16, 4], strides = [1, 1]} : vector<16x24xf32> to vector<16x4xf32>
    %cst_24 = arith.constant dense<0.000000e+00> : vector<16x16xf32>
    %40 = tpu.matmul %37, %38, %cst_24 {dimension_numbers = #tpu.dot_dimension_numbers<[1], [1], [0], [0], [0, 0, 1, 0], [], []>, precision = #tpu.contract_precision<fp32>} : vector<16x4xf32>, vector<16x4xf32>, vector<16x16xf32> -> vector<16x16xf32>
    %c1 = arith.constant 1 : index
    %c0_25 = arith.constant 0 : index
    %c0_26 = arith.constant 0 : index
    %41 = vector.load %arg6[%c1, %c0_25, %c0_26] : memref<2x16x16xf32, #tpu.memory_space<vmem>>, vector<1x16x16xf32>
    %42 = vector.shape_cast %41 : vector<1x16x16xf32> to vector<16x16xf32>
    %43 = arith.addf %40, %42 : vector<16x16xf32>
    %cst_27 = arith.constant dense<0xFF800000> : vector<16xf32>
    %44 = vector.multi_reduction <maximumf>, %43, %cst_27 [1] : vector<16x16xf32> to vector<16xf32>
    %45 = vector.shape_cast %44 : vector<16xf32> to vector<16x1xf32>
    %46 = vector.broadcast %45 : vector<16x1xf32> to vector<16x16xf32>
    %47 = arith.subf %43, %46 : vector<16x16xf32>
    %48 = math.exp %47 : vector<16x16xf32>
    %cst_28 = arith.constant dense<0.000000e+00> : vector<16xf32>
    %49 = vector.multi_reduction <add>, %48, %cst_28 [1] : vector<16x16xf32> to vector<16xf32>
    %50 = vector.shape_cast %49 : vector<16xf32> to vector<16x1xf32>
    %51 = tpu.reciprocal %50 : vector<16x1xf32> -> vector<16x1xf32>
    %52 = vector.broadcast %51 : vector<16x1xf32> to vector<16x16xf32>
    %53 = arith.mulf %48, %52 : vector<16x16xf32>
    %cst_29 = arith.constant dense<0.000000e+00> : vector<16x4xf32>
    %54 = tpu.matmul %53, %39, %cst_29 {dimension_numbers = #tpu.dot_dimension_numbers<[1], [0], [0], [1], [0, 0, 1, 1], [], []>, precision = #tpu.contract_precision<fp32>} : vector<16x16xf32>, vector<16x4xf32>, vector<16x4xf32> -> vector<16x4xf32>
    %c1_30 = arith.constant 1 : index
    %c0_31 = arith.constant 0 : index
    %c0_32 = arith.constant 0 : index
    %55 = vector.load %arg7[%c1_30, %c0_31, %c0_32] : memref<2x4x32xf32, #tpu.memory_space<vmem>>, vector<1x4x32xf32>
    %56 = vector.shape_cast %55 : vector<1x4x32xf32> to vector<4x32xf32>
    %cst_33 = arith.constant dense<0.000000e+00> : vector<16x32xf32>
    %57 = tpu.matmul %54, %56, %cst_33 {dimension_numbers = #tpu.dot_dimension_numbers<[1], [0], [0], [1], [0, 0, 1, 1], [], []>, precision = #tpu.contract_precision<fp32>} : vector<16x4xf32>, vector<4x32xf32>, vector<16x32xf32> -> vector<16x32xf32>
    %58 = arith.addf %36, %57 : vector<16x32xf32>
    %c0_34 = arith.constant 0 : index
    %c0_35 = arith.constant 0 : index
    %59 = vector.load %arg8[%c0_34, %c0_35] : memref<1x32xf32, #tpu.memory_space<vmem>>, vector<1x32xf32>
    %60 = vector.broadcast %59 : vector<1x32xf32> to vector<16x32xf32>
    %61 = arith.addf %58, %60 : vector<16x32xf32>
    %c0_36 = arith.constant 0 : index
    %c0_37 = arith.constant 0 : index
    %c0_38 = arith.constant 0 : index
    %62 = vector.load %arg9[%c0_36, %c0_37, %c0_38] : memref<1x16x32xf32, #tpu.memory_space<vmem>>, vector<1x16x32xf32>
    %63 = vector.shape_cast %62 : vector<1x16x32xf32> to vector<16x32xf32>
    %64 = vector.shape_cast %61 : vector<16x32xf32> to vector<1x16x32xf32>
    tpu.vector_store %arg9[%c0_36, %c0_37, %c0_38], %64 {strides = array<i32>} : memref<1x16x32xf32, #tpu.memory_space<vmem>>, vector<1x16x32xf32>,
    return
  }
  func.func @transform_0(%arg0: i32) -> (i32, i32, i32) {
    %c0_i32 = arith.constant 0 : i32
    %c0_i32_0 = arith.constant 0 : i32
    %c0_i32_1 = arith.constant 0 : i32
    return %arg0, %c0_i32, %c0_i32_0 : i32, i32, i32
  }
  func.func @transform_1(%arg0: i32) -> (i32, i32) {
    %c0_i32 = arith.constant 0 : i32
    %c0_i32_0 = arith.constant 0 : i32
    %c0_i32_1 = arith.constant 0 : i32
    return %c0_i32, %c0_i32_0 : i32, i32
  }
  func.func @transform_2(%arg0: i32) -> (i32, i32) {
    %c0_i32 = arith.constant 0 : i32
    %c0_i32_0 = arith.constant 0 : i32
    %c0_i32_1 = arith.constant 0 : i32
    return %c0_i32, %c0_i32_0 : i32, i32
  }
  func.func @transform_3(%arg0: i32) -> (i32, i32) {
    %c0_i32 = arith.constant 0 : i32
    %c0_i32_0 = arith.constant 0 : i32
    %c0_i32_1 = arith.constant 0 : i32
    return %c0_i32, %c0_i32_0 : i32, i32
  }
  func.func @transform_4(%arg0: i32) -> (i32, i32) {
    %c0_i32 = arith.constant 0 : i32
    %c0_i32_0 = arith.constant 0 : i32
    %c0_i32_1 = arith.constant 0 : i32
    return %c0_i32, %c0_i32_0 : i32, i32
  }
  func.func @transform_5(%arg0: i32) -> (i32, i32, i32) {
    %c0_i32 = arith.constant 0 : i32
    %c0_i32_0 = arith.constant 0 : i32
    %c0_i32_1 = arith.constant 0 : i32
    %c0_i32_2 = arith.constant 0 : i32
    return %c0_i32, %c0_i32_0, %c0_i32_1 : i32, i32, i32
  }
  func.func @transform_6(%arg0: i32) -> (i32, i32, i32) {
    %c0_i32 = arith.constant 0 : i32
    %c0_i32_0 = arith.constant 0 : i32
    %c0_i32_1 = arith.constant 0 : i32
    %c0_i32_2 = arith.constant 0 : i32
    return %c0_i32, %c0_i32_0, %c0_i32_1 : i32, i32, i32
  }
  func.func @transform_7(%arg0: i32) -> (i32, i32) {
    %c0_i32 = arith.constant 0 : i32
    %c0_i32_0 = arith.constant 0 : i32
    %c0_i32_1 = arith.constant 0 : i32
    return %c0_i32, %c0_i32_0 : i32, i32
  }
  func.func @transform_8(%arg0: i32) -> (i32, i32, i32) {
    %c0_i32 = arith.constant 0 : i32
    %c0_i32_0 = arith.constant 0 : i32
    %c0_i32_1 = arith.constant 0 : i32
    return %arg0, %c0_i32, %c0_i32_0 : i32, i32, i32
  }
}

</mosaic_0001>

<bundles_post_ra>
// kernel: global_self_attention_v3.1
= control target key start
LH: loop header
LB: loop body
LE: loop exit
PB: predicated region body
PF: predicated region fallthrough
CT: control target
= control target key end

     0   :  { %s7439_s27 = smov 0   ;;  %s8731_s0 = inlined_call_operand.vmem [shape: f32[2,16,512], index: 0, kind: input, shape index: {}]   ;;  %s8732_s1 = inlined_call_operand.vmem [shape: f32[512,8], index: 1, kind: input, shape index: {}]   ;;  %s8733_s2 = inlined_call_operand.vmem [shape: f32[1,8], index: 2, kind: input, shape index: {}]   ;;  %s8734_s3 = inlined_call_operand.vmem [shape: f32[1,8], index: 3, kind: input, shape index: {}]   ;;  %s8735_s4 = inlined_call_operand.vmem [shape: f32[8,24], index: 4, kind: input, shape index: {}]   ;;  %s8736_s5 = inlined_call_operand.vmem [shape: f32[2,16,16], index: 5, kind: input, shape index: {}]   ;;  %s8737_s6 = inlined_call_operand.vmem [shape: f32[2,4,32], index: 6, kind: input, shape index: {}]   ;;  %s8738_s7 = inlined_call_operand.vmem [shape: f32[1,32], index: 7, kind: input, shape index: {}]   ;;  %s8739_s8 = inlined_call_operand.vmem [shape: f32[2,16,32], index: 8, kind: output, shape index: {}]  }
   0x1 LB: > { %s5913_s28 = sadd.s32 4294967295, %s7387_s27   ;;  %p5917_p0 = scmp.ge.s32.totalorder %s7387_s27, 1  ;;  %s7387_s27 = sphi %s7439_s27, %s18_s27  }
   0x2   : > { %p262_p1 = scmp.lt.s32.totalorder %s7387_s27, 3 }
   0x4   : > { %p263_p2 = pnand %p5917_p0, %p262_p1 }
   0x6   : > { %266 = sbr.rel (%p263_p2) target bundleno = 2040 (0x7f8), region = 52 }
   0xd   : > { %v330_v0 = vld [vmem:[%s8732_s1 + $0x80] sm:$0xff]  ;;  %v331_v1 = vld [vmem:[%s8732_s1 + $0x88] sm:$0xff]  ;;  %v332_v7 = vld [vmem:[%s8732_s1 + $0x90] sm:$0xff]  ;;  %p7639_p3 = scmp.lt.s32.totalorder %s5913_s28, 1  ;;  %vm2237_vm0 = vcmask 64512   ;;  %vm2741_vm1 = vcmask 31744  }
   0xe   : > { %v314_v2 = vld [vmem:[%s8732_s1] sm:$0xff]  ;;  %v427_v3 = vand.u32 4294901760, %v330_v0  ;;  %v430_v4 = vand.u32 4294901760, %v331_v1  ;;  %v315_v5 = vld [vmem:[%s8732_s1 + $0x8] sm:$0xff]  ;;  %v333_v8 = vld [vmem:[%s8732_s1 + $0x98] sm:$0xff]  ;;  %v433_v10 = vand.u32 4294901760, %v332_v7 }
   0xf   : > { %v379_v6 = vand.u32 4294901760, %v314_v2  ;;  %v382_v9 = vand.u32 4294901760, %v315_v5  ;;  %v436_v11 = vand.u32 4294901760, %v333_v8  ;;  %v316_v12 = vld [vmem:[%s8732_s1 + $0x10] sm:$0xff]  ;;  %v317_v13 = vld [vmem:[%s8732_s1 + $0x18] sm:$0xff]  ;;  %v334_v18 = vld [vmem:[%s8732_s1 + $0xa0] sm:$0xff] }
  0x10   : > { %v7471_v14 = vpack.c.bf16 %v430_v4, %v427_v3  ;;  %v385_v16 = vand.u32 4294901760, %v316_v12  ;;  %v388_v17 = vand.u32 4294901760, %v317_v13  ;;  %v335_v19 = vld [vmem:[%s8732_s1 + $0xa8] sm:$0xff]  ;;  %v318_v23 = vld [vmem:[%s8732_s1 + $0x20] sm:$0xff]  ;;  %v7494_v25 = vsub.f32 %v332_v7, %v433_v10  ;;  %v336_v37 = vld [vmem:[%s8732_s1 + $0xb0] sm:$0xff]  ;;  %s8974_s28 = smov (!%p7639_p3, %s5913_s28), 1 }
  0x11   : > { %v7473_v15 = vsub.f32 %v314_v2, %v379_v6  ;;  %v7481_v20 = vpack.c.bf16 %v382_v9, %v379_v6  ;;  %v7483_v21 = vsub.f32 %v315_v5, %v382_v9  ;;  %v7485_v22 = vpack.c.bf16 %v436_v11, %v433_v10  ;;  %v319_v24 = vld [vmem:[%s8732_s1 + $0x28] sm:$0xff]  ;;  %v337_v42 = vld [vmem:[%s8732_s1 + $0xb8] sm:$0xff]  ;;  %v320_v55 = vld [vmem:[%s8732_s1 + $0x30] sm:$0xff]  ;;  %s5930_s30 = sshll.u32 %s8974_s28, 6  ;;  %s7390_s9 = smov 120  }
  0x12   : > { %6797 = vmatprep.subr.bf16.mxu0 %v7471_v14  ;;  %v7496_v26 = vsub.f32 %v333_v8, %v436_v11  ;;  %v7498_v27 = vpack.c.bf16 %v388_v17, %v385_v16  ;;  %v7500_v28 = vsub.f32 %v316_v12, %v385_v16  ;;  %v439_v29 = vand.u32 4294901760, %v334_v18  ;;  %v321_v56 = vld [vmem:[%s8732_s1 + $0x38] sm:$0xff]  ;;  %v338_v5 = vld [vmem:[%s8732_s1 + $0xc0] sm:$0xff]  ;;  %v339_v6 = vld [vmem:[%s8732_s1 + $0xc8] sm:$0xff]  ;;  %s7734_s15 = scalar_lea.vmem %s8731_s0, %s5930_s30  ;;  %s7389_s30 = smov 116  }
  0x13   : > { %6799 = vmatpush3.bf16.msra.mxu0 %v7481_v20  ;;  %v442_v30 = vand.u32 4294901760, %v335_v19  ;;  %v7503_v31 = vsub.f32 %v330_v0, %v427_v3  ;;  %v7505_v32 = vsub.f32 %v331_v1, %v430_v4  ;;  %v391_v33 = vand.u32 4294901760, %v318_v23  ;;  %v322_v11 = vld [vmem:[%s8732_s1 + $0x40] sm:$0xff]  ;;  %s7391_s10 = smov 124   ;;  %s7392_s20 = smov 112  }
  0x14   : > { %6801 = vmatprep.subr.bf16.mxu0 %v7485_v22  ;;  %v394_v34 = vand.u32 4294901760, %v319_v24  ;;  %v8757_v35 = vand.u32 4294901760, %v7473_v15  ;;  %v8756_v36 = vand.u32 4294901760, %v7483_v21  ;;  %v7513_v38 = vsub.f32 %v317_v13, %v388_v17  ;;  %s7393_s21 = smov 108   ;;  %s5931_s25 = sshll.u32 %s8974_s28, 4 }
  0x15   : > { %v7515_v39 = vpack.c.bf16 %v442_v30, %v439_v29  ;;  %v7517_v40 = vsub.f32 %v334_v18, %v439_v29  ;;  %v8759_v41 = vand.u32 4294901760, %v7503_v31  ;;  %v7523_v43 = vsub.f32 %v335_v19, %v442_v30  ;;  %v323_v29 = vld [vmem:[%s8732_s1 + $0x48] sm:$0xff] }
  0x16   : > { %v8758_v44 = vand.u32 4294901760, %v7505_v32  ;;  %v7526_v45 = vpack.c.bf16 %v394_v34, %v391_v33  ;;  %v7528_v46 = vsub.f32 %v318_v23, %v391_v33  ;;  %v509_v48 = vsub.f32 %v7473_v15, %v8757_v35 }
  0x17   : > { %6803 = vmatpush3.bf16.msra.mxu0 %v7498_v27  ;;  %v621_v47 = vsub.f32 %v7503_v31, %v8759_v41  ;;  %v516_v49 = vsub.f32 %v7483_v21, %v8756_v36  ;;  %v445_v50 = vand.u32 4294901760, %v336_v37  ;;  %v448_v52 = vand.u32 4294901760, %v337_v42  ;;  %v307_v41 = vld [vmem:[%s7734_s15 + $0x8] sm:$0xff] }
  0x18   : > { %6805 = vmatprep.subr.bf16.mxu0 %v7515_v39  ;;  %v628_v51 = vsub.f32 %v7505_v32, %v8758_v44  ;;  %v8755_v53 = vand.u32 4294901760, %v7494_v25  ;;  %v8752_v54 = vand.u32 4294901760, %v7496_v26  ;;  %v7552_v58 = vsub.f32 %v319_v24, %v394_v34 }
  0x19   : > { %v622_v57 = vand.u32 4294901760, %v621_v47  ;;  %v510_v59 = vand.u32 4294901760, %v509_v48  ;;  %v517_v60 = vand.u32 4294901760, %v516_v49  ;;  %v7554_v62 = vpack.c.bf16 %v448_v52, %v445_v50 }
  0x1a   : > { %v629_v61 = vand.u32 4294901760, %v628_v51  ;;  %v7556_v63 = vsub.f32 %v336_v37, %v445_v50  ;;  %v635_v0 = vsub.f32 %v7494_v25, %v8755_v53  ;;  %v642_v2 = vsub.f32 %v7496_v26, %v8752_v54 }
  0x1b   : > { %6807 = vmatpush3.bf16.msra.mxu0 %v7526_v45  ;;  %v6830_v1 = vpack.c.bf16 %v517_v60, %v510_v59  ;;  %v397_v3 = vand.u32 4294901760, %v320_v55  ;;  %v400_v4 = vand.u32 4294901760, %v321_v56  ;;  %v8751_v9 = vand.u32 4294901760, %v7500_v28 }
  0x1c   : > { %v6828_v7 = vpack.c.bf16 %v629_v61, %v622_v57  ;;  %6809 = vmatprep.subr.bf16.mxu0 %v7554_v62  ;;  %v636_v8 = vand.u32 4294901760, %v635_v0  ;;  %v8748_v10 = vand.u32 4294901760, %v7513_v38  ;;  %v7577_v12 = vsub.f32 %v337_v42, %v448_v52  ;;  %v341_v57 = vld [vmem:[%s8732_s1 + $0xd8] sm:$0xff] }
  0x1d   : > { %v643_v13 = vand.u32 4294901760, %v642_v2  ;;  %v7579_v16 = vpack.c.bf16 %v400_v4, %v397_v3  ;;  %v7581_v17 = vsub.f32 %v320_v55, %v397_v3  ;;  %v523_v18 = vsub.f32 %v7500_v28, %v8751_v9 }
  0x1e   : > { %6829 = vmatprep.subr.bf16.mxu1 %v6828_v7  ;;  %v530_v19 = vsub.f32 %v7513_v38, %v8748_v10  ;;  %v451_v23 = vand.u32 4294901760, %v338_v5  ;;  %v454_v24 = vand.u32 4294901760, %v339_v6  ;;  %v8747_v33 = vand.u32 4294901760, %v7517_v40 }
  0x1f   : > { %6831 = vmatpush3.bf16.msra.mxu1 %v6830_v1  ;;  %v6832_v30 = vpack.c.bf16 %v643_v13, %v636_v8  ;;  %6811 = vmatpush3.bf16.msra.mxu0 %v7579_v16  ;;  %v8745_v34 = vand.u32 4294901760, %v7523_v43  ;;  %v403_v37 = vand.u32 4294901760, %v322_v11  ;;  %v7595_v42 = vsub.f32 %v321_v56, %v400_v4  ;;  %v340_v56 = vld [vmem:[%s8732_s1 + $0xd0] sm:$0xff] }
  0x20   : > { %v524_v47 = vand.u32 4294901760, %v523_v18  ;;  %v531_v48 = vand.u32 4294901760, %v530_v19  ;;  %v7597_v49 = vpack.c.bf16 %v454_v24, %v451_v23  ;;  %v7599_v50 = vsub.f32 %v338_v5, %v451_v23  ;;  %v324_v1 = vld [vmem:[%s8732_s1 + $0x50] sm:$0xff]  ;;  %v325_v18 = vld [vmem:[%s8732_s1 + $0x58] sm:$0xff] }
  0x21   : > { %6833 = vmatprep.subr.bf16.mxu1 %v6832_v30  ;;  %v649_v51 = vsub.f32 %v7517_v40, %v8747_v33  ;;  %v656_v52 = vsub.f32 %v7523_v43, %v8745_v34  ;;  %v406_v55 = vand.u32 4294901760, %v323_v29  ;;  %v7614_v60 = vsub.f32 %v339_v6, %v454_v24 }
  0x22   : > { %v6834_v59 = vpack.c.bf16 %v531_v48, %v524_v47  ;;  %6813 = vmatprep.subr.bf16.mxu0 %v7597_v49  ;;  %v8744_v61 = vand.u32 4294901760, %v7528_v46  ;;  %v8742_v0 = vand.u32 4294901760, %v7552_v58  ;;  %v7623_v5 = vsub.f32 %v322_v11, %v403_v37 }
  0x23   : > { %v650_v2 = vand.u32 4294901760, %v649_v51  ;;  %v657_v3 = vand.u32 4294901760, %v656_v52  ;;  %v7621_v4 = vpack.c.bf16 %v406_v55, %v403_v37  ;;  %v457_v8 = vand.u32 4294901760, %v340_v56 }
  0x24   : > { %6835 = vmatpush3.bf16.msra.mxu1 %v6834_v59  ;;  %v537_v6 = vsub.f32 %v7528_v46, %v8744_v61  ;;  %v544_v7 = vsub.f32 %v7552_v58, %v8742_v0  ;;  %v460_v13 = vand.u32 4294901760, %v341_v57  ;;  %v8741_v11 = vand.u32 4294901760, %v7556_v63 }
  0x25   : > { %v6836_v19 = vpack.c.bf16 %v657_v3, %v650_v2  ;;  %6815 = vmatpush3.bf16.msra.mxu0 %v7621_v4  ;;  %v8740_v23 = vand.u32 4294901760, %v7577_v12  ;;  %v409_v24 = vand.u32 4294901760, %v324_v1  ;;  %v7643_v30 = vsub.f32 %v323_v29, %v406_v55  ;;  %v342_v29 = vld [vmem:[%s8732_s1 + $0xe0] sm:$0xff]  ;;  %v343_v55 = vld [vmem:[%s8732_s1 + $0xe8] sm:$0xff] }
  0x26   : > { %v538_v37 = vand.u32 4294901760, %v537_v6  ;;  %v545_v47 = vand.u32 4294901760, %v544_v7  ;;  %v7645_v48 = vpack.c.bf16 %v460_v13, %v457_v8  ;;  %v7647_v51 = vsub.f32 %v340_v56, %v457_v8  ;;  %v326_v8 = vld [vmem:[%s8732_s1 + $0x60] sm:$0xff] }
  0x27   : > { %6837 = vmatprep.subr.bf16.mxu1 %v6836_v19  ;;  %v663_v52 = vsub.f32 %v7556_v63, %v8741_v11  ;;  %v670_v59 = vsub.f32 %v7577_v12, %v8740_v23  ;;  %v412_v2 = vand.u32 4294901760, %v325_v18  ;;  %v7662_v3 = vsub.f32 %v341_v57, %v460_v13 }
  0x28   : > { %8843 = vst [vmem:[#allocation2_spill] sm:$0xff] %v7645_v48  ;;  %v6838_v56 = vpack.c.bf16 %v545_v47, %v538_v37  ;;  %6817 = vmatprep.subr.bf16.mxu0 %v7645_v48  ;;  %v8743_v6 = vand.u32 4294901760, %v7581_v17  ;;  %v8746_v7 = vand.u32 4294901760, %v7595_v42  ;;  %v7671_v0 = vsub.f32 %v324_v1, %v409_v24  ;;  %v327_v1 = vld [vmem:[%s8732_s1 + $0x68] sm:$0xff] }
  0x29   : > { %v664_v19 = vand.u32 4294901760, %v663_v52  ;;  %v671_v23 = vand.u32 4294901760, %v670_v59  ;;  %v7669_v11 = vpack.c.bf16 %v412_v2, %v409_v24  ;;  %v463_v37 = vand.u32 4294901760, %v342_v29 }
  0x2a   : > { %6839 = vmatpush3.bf16.msra.mxu1 %v6838_v56  ;;  %v551_v57 = vsub.f32 %v7581_v17, %v8743_v6  ;;  %v558_v13 = vsub.f32 %v7595_v42, %v8746_v7  ;;  %v466_v47 = vand.u32 4294901760, %v343_v55  ;;  %v8750_v52 = vand.u32 4294901760, %v7599_v50 }
  0x2b   : > { %8844 = vst [vmem:[#allocation3_spill] sm:$0xff] %v7669_v11  ;;  %v6840_v24 = vpack.c.bf16 %v671_v23, %v664_v19  ;;  %6819 = vmatpush3.bf16.msra.mxu0 %v7669_v11  ;;  %v8749_v59 = vand.u32 4294901760, %v7614_v60  ;;  %v415_v56 = vand.u32 4294901760, %v326_v8  ;;  %v7691_v6 = vsub.f32 %v325_v18, %v412_v2  ;;  %v344_v18 = vld [vmem:[%s8732_s1 + $0xf0] sm:$0xff]  ;;  %v345_v2 = vld [vmem:[%s8732_s1 + $0xf8] sm:$0xff]  ;;  %v311_v11 = vld [vmem:[%s7734_s15 + $0x28] sm:$0xff] }
  0x2c   : > { %v552_v61 = vand.u32 4294901760, %v551_v57  ;;  %v559_v34 = vand.u32 4294901760, %v558_v13  ;;  %v7693_v7 = vpack.c.bf16 %v466_v47, %v463_v37  ;;  %v7695_v33 = vsub.f32 %v342_v29, %v463_v37 }
  0x2d   : > { %6841 = vmatprep.subr.bf16.mxu1 %v6840_v24  ;;  %v677_v23 = vsub.f32 %v7599_v50, %v8750_v52  ;;  %v684_v19 = vsub.f32 %v7614_v60, %v8749_v59  ;;  %v418_v10 = vand.u32 4294901760, %v327_v1  ;;  %v7711_v57 = vsub.f32 %v343_v55, %v466_v47  ;;  %v328_v24 = vld [vmem:[%s8732_s1 + $0x70] sm:$0xff] }
  0x2e   : > { %8845 = vst [vmem:[#allocation4_spill] sm:$0xff] %v7693_v7  ;;  %v6842_v29 = vpack.c.bf16 %v559_v34, %v552_v61  ;;  %6821 = vmatprep.subr.bf16.mxu0 %v7693_v7  ;;  %v8754_v13 = vand.u32 4294901760, %v7623_v5  ;;  %v8753_v37 = vand.u32 4294901760, %v7643_v30  ;;  %v7720_v54 = vsub.f32 %v326_v8, %v415_v56 }
  0x2f   : > { %v678_v59 = vand.u32 4294901760, %v677_v23  ;;  %v685_v52 = vand.u32 4294901760, %v684_v19  ;;  %v7718_v9 = vpack.c.bf16 %v418_v10, %v415_v56  ;;  %v469_v55 = vand.u32 4294901760, %v344_v18  ;;  %v329_v23 = vld [vmem:[%s8732_s1 + $0x78] sm:$0xff] }
  0x30   : > { %6843 = vmatpush3.bf16.msra.mxu1 %v6842_v29  ;;  %v565_v34 = vsub.f32 %v7623_v5, %v8754_v13  ;;  %v572_v61 = vsub.f32 %v7643_v30, %v8753_v37  ;;  %v472_v47 = vand.u32 4294901760, %v345_v2  ;;  %v8762_v56 = vand.u32 4294901760, %v7647_v51 }
  0x31   : > { %8846 = vst [vmem:[#allocation5_spill] sm:$0xff] %v7718_v9  ;;  %v6844_v8 = vpack.c.bf16 %v685_v52, %v678_v59  ;;  %6823 = vmatpush3.bf16.msra.mxu0 %v7718_v9  ;;  %v8763_v19 = vand.u32 4294901760, %v7662_v3  ;;  %v421_v29 = vand.u32 4294901760, %v328_v24  ;;  %v7739_v37 = vsub.f32 %v327_v1, %v418_v10 }
  0x32   : > { %v566_v13 = vand.u32 4294901760, %v565_v34  ;;  %v573_v53 = vand.u32 4294901760, %v572_v61  ;;  %v7741_v36 = vpack.c.bf16 %v472_v47, %v469_v55  ;;  %v7743_v35 = vsub.f32 %v344_v18, %v469_v55  ;;  %v306_v34 = vld [vmem:[%s7734_s15] sm:$0xff] }
  0x33   : > { %6845 = vmatprep.subr.bf16.mxu1 %v6844_v8  ;;  %v691_v52 = vsub.f32 %v7647_v51, %v8762_v56  ;;  %v698_v59 = vsub.f32 %v7662_v3, %v8763_v19  ;;  %v424_v44 = vand.u32 4294901760, %v329_v23  ;;  %v7753_v10 = vsub.f32 %v345_v2, %v472_v47 }
  0x34   : > { %8847 = vst [vmem:[#allocation6_spill] sm:$0xff] %v7741_v36  ;;  %v6846_v9 = vpack.c.bf16 %v573_v53, %v566_v13  ;;  %6825 = vmatprep.subr.bf16.mxu0 %v7741_v36  ;;  %v8764_v1 = vand.u32 4294901760, %v7671_v0  ;;  %v8765_v18 = vand.u32 4294901760, %v7691_v6  ;;  %v7760_v56 = vsub.f32 %v328_v24, %v421_v29 }
  0x35   : > { %v692_v61 = vand.u32 4294901760, %v691_v52  ;;  %v699_v55 = vand.u32 4294901760, %v698_v59  ;;  %v7758_v8 = vpack.c.bf16 %v424_v44, %v421_v29  ;;  %v7768_v13 = vand.u32 4294901760, %v307_v41 }
  0x36   : > { %6847 = vmatpush3.bf16.msra.mxu1 %v6846_v9  ;;  %v579_v53 = vsub.f32 %v7671_v0, %v8764_v1  ;;  %v586_v2 = vsub.f32 %v7691_v6, %v8765_v18  ;;  %v8768_v47 = vand.u32 4294901760, %v7695_v33  ;;  %v8774_v52 = vand.u32 4294901760, %v7711_v57 }
  0x37   : > { %8848 = vst [vmem:[#allocation7_spill] sm:$0xff] %v7758_v8  ;;  %8849 = vst [vmem:[#allocation8_spill] sm:$0xff] %v7768_v13  ;;  %v6848_v19 = vpack.c.bf16 %v699_v55, %v692_v61  ;;  %6827 = vmatpush3.bf16.msra.mxu0 %v7758_v8  ;;  %v6860_v9 = vpack.c.bf16 %v7505_v32, %v7503_v31  ;;  %v7775_v24 = vand.u32 4294901760, %v306_v34  ;;  %730 = vmatprep.mubr.f32.mxu1 %v7768_v13  ;;  %vm3252_vm2 = vcmask 130048  }
  0x38   : > { %v580_v29 = vand.u32 4294901760, %v579_v53  ;;  %v587_v59 = vand.u32 4294901760, %v586_v2  ;;  %v7778_v1 = vsub.f32 %v307_v41, %v7768_v13  ;;  %v705_v18 = vsub.f32 %v7695_v33, %v8768_v47 }
  0x39   : > { %6849 = vmatprep.subr.bf16.mxu1 %v6848_v19  ;;  %v712_v61 = vsub.f32 %v7711_v57, %v8774_v52  ;;  %6861 = vmatprep.subr.bf16.mxu0 %v6860_v9  ;;  %v7788_v55 = vsub.f32 %v306_v34, %v7775_v24  ;;  %v8773_v53 = vand.u32 4294901760, %v7720_v54  ;;  %v8775_v41 = vand.u32 4294901760, %v7739_v37 }
  0x3a   : > { %v7792_v2 = vsub.f32 %v329_v23, %v424_v44  ;;  %v6850_v8 = vpack.c.bf16 %v587_v59, %v580_v29  ;;  %v8776_v47 = vand.u32 4294901760, %v7778_v1  ;;  %v706_v36 = vand.u32 4294901760, %v705_v18 }
  0x3b   : > { %8850 = vst [vmem:[#allocation9_spill] sm:$0xff] %v7788_v55  ;;  %v713_v13 = vand.u32 4294901760, %v712_v61  ;;  %v8781_v19 = vand.u32 4294901760, %v7788_v55  ;;  %v593_v9 = vsub.f32 %v7720_v54, %v8773_v53  ;;  %v600_v34 = vsub.f32 %v7739_v37, %v8775_v41 }
  0x3c   : > { %6851 = vmatpush3.bf16.msra.mxu1 %v6850_v8  ;;  %v477_v44 = vsub.f32 %v7778_v1, %v8776_v47  ;;  %v6862_v23 = vpack.c.bf16 %v7483_v21, %v7473_v15  ;;  %v8782_v18 = vand.u32 4294901760, %v7743_v35  ;;  %v8783_v29 = vand.u32 4294901760, %v7753_v10 }
  0x3d   : > { %v6852_v59 = vpack.c.bf16 %v713_v13, %v706_v36  ;;  %v483_v61 = vsub.f32 %v7788_v55, %v8781_v19  ;;  %v594_v53 = vand.u32 4294901760, %v593_v9  ;;  %v601_v52 = vand.u32 4294901760, %v600_v34 }
  0x3e   : > { %v478_v41 = vand.u32 4294901760, %v477_v44  ;;  %v719_v8 = vsub.f32 %v7743_v35, %v8782_v18  ;;  %v726_v47 = vsub.f32 %v7753_v10, %v8783_v29  ;;  %v8785_v7 = vand.u32 4294901760, %v7760_v56 }
  0x3f   : > { %6853 = vmatprep.subr.bf16.mxu1 %v6852_v59  ;;  %v484_v36 = vand.u32 4294901760, %v483_v61  ;;  %v6854_v13 = vpack.c.bf16 %v601_v52, %v594_v53  ;;  %v6864_v9 = vpack.c.bf16 %v7496_v26, %v7494_v25  ;;  %v8784_v34 = vand.u32 4294901760, %v7792_v2  ;;  %v310_v52 = vld [vmem:[%s7734_s15 + $0x20] sm:$0xff] }
  0x40   : > { %479 = vmatprep.mubr.f32.mxu0 %v478_v41  ;;  %v720_v44 = vand.u32 4294901760, %v719_v8  ;;  %v727_v19 = vand.u32 4294901760, %v726_v47  ;;  %v607_v18 = vsub.f32 %v7760_v56, %v8785_v7  ;;  %v7829_v61 = vand.u32 4294901760, %v311_v11 }
  0x41   : > { %485 = vmatmul.mubr.f32.vlgmr.msra.gmra.mrb[0].mxu0 %v484_v36  ;;  %6855 = vmatpush3.bf16.msra.mxu1 %v6854_v13  ;;  %v614_v59 = vsub.f32 %v7792_v2, %v8784_v34  ;;  %v6866_v41 = vpack.c.bf16 %v7513_v38, %v7500_v28  ;;  %v6868_v8 = vpack.c.bf16 %v7523_v43, %v7517_v40  ;;  %v7839_v13 = vand.u32 4294901760, %v310_v52 }
  0x42   : > { %6863 = vmatpush3.bf16.msra.mxu0 %v6862_v23  ;;  %v6856_v53 = vpack.c.bf16 %v727_v19, %v720_v44  ;;  %v608_v29 = vand.u32 4294901760, %v607_v18  ;;  %v7837_v36 = vsub.f32 %v311_v11, %v7829_v61  ;;  %v6870_v23 = vpack.c.bf16 %v7552_v58, %v7528_v46 }
  0x43   : > { %6865 = vmatprep.subr.bf16.mxu0 %v6864_v9  ;;  %v615_v47 = vand.u32 4294901760, %v614_v59  ;;  %v6872_v19 = vpack.c.bf16 %v7577_v12, %v7556_v63  ;;  %v8851_v18 = vand.u32 4294901760, %v7503_v31  ;;  %v8852_v9 = vand.u32 4294901760, %v7505_v32 }
  0x44   : > { %6857 = vmatprep.subr.bf16.mxu1 %v6856_v53  ;;  %v491_v59 = vand.u32 4294901760, %v7837_v36  ;;  %v7851_v11 = vsub.f32 %v310_v52, %v7839_v13  ;;  %v8853_v53 = vand.u32 4294901760, %v7473_v15  ;;  %v8855_v7 = vand.u32 4294901760, %v7494_v25 }
  0x45   : > { %v6858_v34 = vpack.c.bf16 %v615_v47, %v608_v29  ;;  %v6924_v44 = vpack.c.bf16 %v8852_v9, %v8851_v18  ;;  %v8854_v29 = vand.u32 4294901760, %v7483_v21  ;;  %v8856_v55 = vand.u32 4294901760, %v7496_v26 }
  0x46   : > { %6867 = vmatpush3.bf16.msra.mxu0 %v6866_v41  ;;  %v8857_v31 = vand.u32 4294901760, %v7500_v28  ;;  %v8858_v32 = vand.u32 4294901760, %v7513_v38  ;;  %v8859_v52 = vand.u32 4294901760, %v7517_v40  ;;  %v8860_v15 = vand.u32 4294901760, %v7523_v43 }
  0x47   : > { %v6926_v47 = vpack.c.bf16 %v8854_v29, %v8853_v53  ;;  %v7861_v48 = vpack.c.bf16 %v8856_v55, %v8855_v7  ;;  %6859 = vmatpush3.bf16.msra.mxu1 %v6858_v34  ;;  %6869 = vmatprep.subr.bf16.mxu0 %v6868_v8  ;;  %v8861_v25 = vand.u32 4294901760, %v7528_v46  ;;  %v8862_v26 = vand.u32 4294901760, %v7552_v58 }
  0x48   : > { %v7867_v41 = vpack.c.bf16 %v8858_v32, %v8857_v31  ;;  %v7873_v21 = vpack.c.bf16 %v8860_v15, %v8859_v52  ;;  %6893 = vmatprep.subr.bf16.mxu1 %v7471_v14  ;;  %v492_v28 = vsub.f32 %v7837_v36, %v491_v59  ;;  %v497_v38 = vand.u32 4294901760, %v7851_v11 }
  0x49   : > { %v7879_v7 = vpack.c.bf16 %v8862_v26, %v8861_v25  ;;  %v8863_v40 = vand.u32 4294901760, %v7556_v63  ;;  %v8864_v43 = vand.u32 4294901760, %v7577_v12  ;;  %v8865_v46 = vand.u32 4294901760, %v7581_v17  ;;  %v8873_v25 = vld [vmem:[#allocation3_spill] sm:$0xff]  ;;  %v362_v26 = vld [vmem:[%s8732_s1 + $0x180] sm:$0xff] }
  0x4a   : > { %v8866_v58 = vand.u32 4294901760, %v7595_v42  ;;  %v8867_v8 = vand.u32 4294901760, %v7599_v50  ;;  %v8868_v18 = vand.u32 4294901760, %v7614_v60  ;;  %v8869_v53 = vand.u32 4294901760, %v7623_v5  ;;  %732 = vmatmul.mubr.f32.vlgmr.msra.gmra.mrb[0].mxu1 %v7775_v24  ;;  %6871 = vmatpush3.bf16.msra.mxu0 %v6870_v23 }
  0x4b   : > { %v7890_v55 = vpack.c.bf16 %v8864_v43, %v8863_v40  ;;  %v8870_v63 = vand.u32 4294901760, %v7643_v30  ;;  %v6874_v12 = vpack.c.bf16 %v7595_v42, %v7581_v17  ;;  %v493_v31 = vand.u32 4294901760, %v492_v28  ;;  %6895 = vmatpush3.bf16.msra.mxu1 %v7481_v20  ;;  %6873 = vmatprep.subr.bf16.mxu0 %v6872_v19  ;;  %v8872_v19 = vld [vmem:[#allocation2_spill] sm:$0xff]  ;;  %v363_v28 = vld [vmem:[%s8732_s1 + $0x188] sm:$0xff]  ;;  %v8874_v40 = vld [vmem:[#allocation4_spill] sm:$0xff] }
  0x4c   : > { %v7896_v34 = vpack.c.bf16 %v8866_v58, %v8865_v46  ;;  %v7902_v9 = vpack.c.bf16 %v8868_v18, %v8867_v8  ;;  %v498_v32 = vsub.f32 %v7851_v11, %v497_v38  ;;  %v6876_v52 = vpack.c.bf16 %v7614_v60, %v7599_v50  ;;  %6897 = vmatprep.subr.bf16.mxu1 %v7485_v22  ;;  %v8875_v43 = vld [vmem:[#allocation9_spill] sm:$0xff]  ;;  %v346_v46 = vld [vmem:[%s8732_s1 + $0x100] sm:$0xff] }
  0x4d   : > { %v7908_v29 = vpack.c.bf16 %v8870_v63, %v8869_v53  ;;  %494 = vmatprep.mubr.f32.mxu0 %v493_v31  ;;  %737 = vmatprep.mubr.f32.mxu1 %v7829_v61  ;;  %v6878_v17 = vpack.c.bf16 %v7643_v30, %v7623_v5  ;;  %v6880_v42 = vpack.c.bf16 %v7662_v3, %v7647_v51  ;;  %v8871_v50 = vand.u32 4294901760, %v7778_v1  ;;  %v8876_v18 = vld [vmem:[#allocation5_spill] sm:$0xff]  ;;  %v8877_v53 = vld [vmem:[#allocation6_spill] sm:$0xff]  ;;  %v8878_v31 = vld [vmem:[#allocation8_spill] sm:$0xff] }
  0x4e   : > { %v499_v15 = vand.u32 4294901760, %v498_v32  ;;  %6875 = vmatpush3.bf16.msra.mxu0 %v6874_v12  ;;  %739 = vmatmul.mubr.f32.gmra.mrb[2].mxu1 %v7839_v13  ;;  %v6882_v60 = vpack.c.bf16 %v7691_v6, %v7671_v0  ;;  %v6884_v5 = vpack.c.bf16 %v7711_v57, %v7695_v33  ;;  %v6886_v30 = vpack.c.bf16 %v7739_v37, %v7720_v54 }
  0x4f   : > { %6899 = vmatpush3.bf16.msra.mxu1 %v7498_v27  ;;  %6877 = vmatprep.subr.bf16.mxu0 %v6876_v52  ;;  %v6890_v23 = vpack.c.bf16 %v7792_v2, %v7760_v56  ;;  %v1345_v58 = vand.u32 4294901760, %v362_v26  ;;  %v1348_v8 = vand.u32 4294901760, %v363_v28  ;;  %v1297_v63 = vand.u32 4294901760, %v346_v46  ;;  %v364_v52 = vld [vmem:[%s8732_s1 + $0x190] sm:$0xff] }
  0x50   : > { %6901 = vmatprep.subr.bf16.mxu1 %v7515_v39  ;;  %500 = vmatmul.mubr.f32.gmra.mrb[2].mxu0 %v499_v15  ;;  %v8879_v15 = vld [vmem:[#allocation7_spill] sm:$0xff]  ;;  %vm4855_vm3 = vcmask 1043456   ;;  %vm5855_vm4 = vcmask 261120  }
  0x51   : > { %874 = vmatprep.mubr.f32.mxu0 %v7778_v1  ;;  %990 = vmatprep.mubr.f32.mxu1 %v8871_v50  ;;  %v6888_v1 = vpack.c.bf16 %v7753_v10, %v7743_v35  ;;  %v7969_v32 = vsub.f32 %v362_v26, %v1345_v58  ;;  %v349_v50 = vld [vmem:[%s8732_s1 + $0x118] sm:$0xff]  ;;  %v8884_v26 = vand.u32 4294901760, %v7691_v6 }
  0x52   : > { %6879 = vmatpush3.bf16.msra.mxu0 %v6878_v17 }
  0x53   : > { %6903 = vmatpush3.bf16.msra.mxu1 %v7526_v45  ;;  %6881 = vmatprep.subr.bf16.mxu0 %v6880_v42  ;;  %v348_v42 = vld [vmem:[%s8732_s1 + $0x110] sm:$0xff] }
  0x54   : > { %6905 = vmatprep.subr.bf16.mxu1 %v7554_v62 }
  0x56   : > { %6883 = vmatpush3.bf16.msra.mxu0 %v6882_v60  ;;  %v8880_v60 = vand.u32 4294901760, %v7647_v51  ;;  %v8886_v51 = vand.u32 4294901760, %v7711_v57  ;;  %v8889_v57 = vand.u32 4294901760, %v7743_v35  ;;  %v8042_v35 = vpack.c.bf16 %v1348_v8, %v1345_v58 }
  0x57   : > { %6907 = vmatpush3.bf16.msra.mxu1 %v7579_v16  ;;  %6885 = vmatprep.subr.bf16.mxu0 %v6884_v5  ;;  %v8881_v5 = vand.u32 4294901760, %v7662_v3  ;;  %v366_v3 = vld [vmem:[%s8732_s1 + $0x1a0] sm:$0xff] }
  0x58   : > { %6909 = vmatprep.subr.bf16.mxu1 %v7597_v49 }
  0x5a   : > { %6887 = vmatpush3.bf16.msra.mxu0 %v6886_v30  ;;  %v6944_v30 = vpack.c.bf16 %v8881_v5, %v8880_v60  ;;  %v8890_v60 = vand.u32 4294901760, %v7753_v10 }
  0x5b   : > { %6911 = vmatpush3.bf16.msra.mxu1 %v7621_v4  ;;  %6889 = vmatprep.subr.bf16.mxu0 %v6888_v1 }
  0x5c   : > { %6913 = vmatprep.subr.bf16.mxu1 %v8872_v19  ;;  %v8029_v5 = vpack.c.bf16 %v8890_v60, %v8889_v57 }
  0x5e   : > { %6891 = vmatpush3.bf16.msra.mxu0 %v6890_v23  ;;  %v8883_v23 = vand.u32 4294901760, %v7671_v0  ;;  %v8887_v0 = vand.u32 4294901760, %v7720_v54  ;;  %v8891_v54 = vand.u32 4294901760, %v7760_v56  ;;  %v350_v56 = vld [vmem:[%s8732_s1 + $0x120] sm:$0xff] }
  0x5f   : > { %6915 = vmatpush3.bf16.msra.mxu1 %v8873_v25  ;;  %6925 = vmatprep.subr.bf16.mxu0 %v6924_v44  ;;  %v347_v44 = vld [vmem:[%s8732_s1 + $0x108] sm:$0xff] }
  0x60   : > { %6917 = vmatprep.subr.bf16.mxu1 %v8874_v40  ;;  %v1300_v12 = vand.u32 4294901760, %v347_v44 }
  0x61   : > { %877 = vmatmul.mubr.f32.vlgmr.msra.gmra.mrb[4].mxu0 %v8875_v43 }
  0x62   : > { %6927 = vmatpush3.bf16.msra.mxu0 %v6926_v47  ;;  %883 = vmatprep.mubr.f32.mxu0 %v7837_v36  ;;  %v7971_v47 = vsub.f32 %v363_v28, %v1348_v8  ;;  %v7984_v17 = vsub.f32 %v347_v44, %v1300_v12  ;;  %v8003_v28 = vpack.c.bf16 %v8884_v26, %v8883_v23  ;;  %v1306_v23 = vand.u32 4294901760, %v349_v50 }
  0x63   : > { %6919 = vmatpush3.bf16.msra.mxu1 %v8876_v18  ;;  %6929 = vmatprep.subr.bf16.mxu0 %v7861_v48  ;;  %v365_v48 = vld [vmem:[%s8732_s1 + $0x198] sm:$0xff]  ;;  %v8046_v26 = vpack.c.bf16 %v1300_v12, %v1297_v63  ;;  %v368_v12 = vld [vmem:[%s8732_s1 + $0x1b0] sm:$0xff] }
  0x64   : > { %6921 = vmatprep.subr.bf16.mxu1 %v8877_v53  ;;  %v1354_v1 = vand.u32 4294901760, %v365_v48 }
  0x65   : > { %886 = vmatmul.mubr.f32.gmra.mrb[6].mxu0 %v7851_v11  ;;  %8893 = vst [vmem:[#allocation2_spill] sm:$0xff] %v8046_v26 }
  0x66   : > { %6931 = vmatpush3.bf16.msra.mxu0 %v7867_v41  ;;  %1171 = vmatprep.mubr.f32.mxu0 %v8878_v31  ;;  %v7982_v41 = vsub.f32 %v346_v46, %v1297_v63  ;;  %v8885_v46 = vand.u32 4294901760, %v7695_v33  ;;  %v8888_v33 = vand.u32 4294901760, %v7739_v37  ;;  %v8892_v37 = vand.u32 4294901760, %v7792_v2  ;;  %v351_v2 = vld [vmem:[%s8732_s1 + $0x128] sm:$0xff] }
  0x67   : > { %6923 = vmatpush3.bf16.msra.mxu1 %v8879_v15  ;;  %6933 = vmatprep.subr.bf16.mxu0 %v7873_v21  ;;  %v1351_v21 = vand.u32 4294901760, %v364_v52 }
  0x68   : > { %6957 = vmatprep.subr.bf16.mxu1 %v7471_v14  ;;  %v8882_v14 = vand.u32 4294901760, %v8875_v43  ;;  %v8009_v44 = vpack.c.bf16 %v8886_v51, %v8885_v46  ;;  %v8801_v43 = vand.u32 4294901760, %v7969_v32  ;;  %v8023_v6 = vpack.c.bf16 %v8888_v33, %v8887_v0 }
  0x69   : > { %v8040_v36 = vpack.c.bf16 %v8892_v37, %v8891_v54  ;;  %v8795_v10 = vand.u32 4294901760, %v7982_v41  ;;  %v8048_v46 = vsub.f32 %v364_v52, %v1351_v21  ;;  %v8050_v51 = vsub.f32 %v365_v48, %v1354_v1  ;;  %v309_v52 = vld [vmem:[%s7734_s15 + $0x18] sm:$0xff] }
  0x6a   : > { %994 = vmatmul.mubr.f32.vlgmr.msra.gmra.mrb[4].mxu1 %v8882_v14  ;;  %6935 = vmatpush3.bf16.msra.mxu0 %v7879_v7  ;;  %v8796_v7 = vand.u32 4294901760, %v7971_v47  ;;  %v1303_v14 = vand.u32 4294901760, %v348_v42  ;;  %v1539_v8 = vsub.f32 %v7969_v32, %v8801_v43  ;;  %v1309_v48 = vand.u32 4294901760, %v350_v56 }
  0x6b   : > { %6959 = vmatpush3.bf16.msra.mxu1 %v7481_v20  ;;  %1001 = vmatprep.mubr.f32.mxu1 %v491_v59  ;;  %v367_v20 = vld [vmem:[%s8732_s1 + $0x1a8] sm:$0xff]  ;;  %v8790_v59 = vand.u32 4294901760, %v7984_v17  ;;  %v8099_v60 = vand.u32 4294901760, %v309_v52 }
  0x6c   : > { %6937 = vmatprep.subr.bf16.mxu0 %v7890_v55  ;;  %6961 = vmatprep.subr.bf16.mxu1 %v7485_v22  ;;  %v1357_v22 = vand.u32 4294901760, %v366_v3  ;;  %v8061_v55 = vpack.c.bf16 %v1354_v1, %v1351_v21  ;;  %v1360_v58 = vand.u32 4294901760, %v367_v20  ;;  %v1546_v63 = vsub.f32 %v7971_v47, %v8796_v7 }
  0x6d   : > { %v8074_v11 = vpack.c.bf16 %v1306_v23, %v1303_v14  ;;  %v1312_v21 = vand.u32 4294901760, %v351_v2  ;;  %v1427_v1 = vsub.f32 %v7982_v41, %v8795_v10  ;;  %v1540_v33 = vand.u32 4294901760, %v1539_v8  ;;  %8895 = vst [vmem:[#allocation4_spill] sm:$0xff] %v8099_v60 }
  0x6e   : > { %1005 = vmatmul.mubr.f32.gmra.mrb[6].mxu1 %v497_v38  ;;  %6939 = vmatpush3.bf16.msra.mxu0 %v7896_v34  ;;  %8894 = vst [vmem:[#allocation3_spill] sm:$0xff] %v8061_v55  ;;  %v8076_v38 = vsub.f32 %v348_v42, %v1303_v14  ;;  %v8078_v34 = vsub.f32 %v349_v50, %v1306_v23  ;;  %v1363_v50 = vand.u32 4294901760, %v368_v12  ;;  %v1547_v57 = vand.u32 4294901760, %v1546_v63  ;;  %v352_v23 = vld [vmem:[%s8732_s1 + $0x130] sm:$0xff] }
  0x6f   : > { %6963 = vmatpush3.bf16.msra.mxu1 %v7498_v27  ;;  %6941 = vmatprep.subr.bf16.mxu0 %v7902_v9  ;;  %v1434_v27 = vsub.f32 %v7984_v17, %v8790_v59  ;;  %v369_v9 = vld [vmem:[%s8732_s1 + $0x1b8] sm:$0xff]  ;;  %v8092_v42 = vsub.f32 %v366_v3, %v1357_v22  ;;  %v8097_v0 = vpack.c.bf16 %v1360_v58, %v1357_v22 }
  0x70   : > { %6965 = vmatprep.subr.bf16.mxu1 %v7515_v39  ;;  %1282 = vmatprep.mubr.f32.mxu1 %v8878_v31  ;;  %v8794_v39 = vand.u32 4294901760, %v8048_v46  ;;  %v8793_v31 = vand.u32 4294901760, %v8050_v51  ;;  %v8102_v14 = vsub.f32 %v367_v20, %v1360_v58  ;;  %v1366_v3 = vand.u32 4294901760, %v369_v9 }
  0x71   : > { %v8791_v54 = vand.u32 4294901760, %v8076_v38  ;;  %v8792_v37 = vand.u32 4294901760, %v8078_v34  ;;  %v8113_v22 = vpack.c.bf16 %v1312_v21, %v1309_v48  ;;  %v1435_v20 = vand.u32 4294901760, %v1434_v27  ;;  %v371_v27 = vld [vmem:[%s8732_s1 + $0x1c8] sm:$0xff] }
  0x72   : > { %6943 = vmatpush3.bf16.msra.mxu0 %v7908_v29  ;;  %v353_v29 = vld [vmem:[%s8732_s1 + $0x138] sm:$0xff]  ;;  %v8117_v58 = vsub.f32 %v351_v2, %v1312_v21  ;;  %v8119_v8 = vsub.f32 %v368_v12, %v1363_v50  ;;  %v1553_v63 = vsub.f32 %v8048_v46, %v8794_v39  ;;  %v1560_v59 = vsub.f32 %v8050_v51, %v8793_v31  ;;  %v370_v2 = vld [vmem:[%s8732_s1 + $0x1c0] sm:$0xff] }
  0x73   : > { %6967 = vmatpush3.bf16.msra.mxu1 %v7526_v45  ;;  %6945 = vmatprep.subr.bf16.mxu0 %v6944_v30  ;;  %8896 = vst [vmem:[#allocation9_spill] sm:$0xff] %v8113_v22  ;;  %v8115_v45 = vsub.f32 %v350_v56, %v1309_v48  ;;  %v1428_v30 = vand.u32 4294901760, %v1427_v1  ;;  %v1315_v56 = vand.u32 4294901760, %v352_v23  ;;  %v1318_v48 = vand.u32 4294901760, %v353_v29 }
  0x74   : > { %6969 = vmatprep.subr.bf16.mxu1 %v7554_v62  ;;  %8897 = vst [vmem:[#allocation5_spill] sm:$0xff] %v8119_v8  ;;  %v8128_v62 = vpack.c.bf16 %v1547_v57, %v1540_v33  ;;  %v8134_v12 = vsub.f32 %v309_v52, %v8099_v60  ;;  %v8138_v21 = vpack.c.bf16 %v1366_v3, %v1363_v50  ;;  %v8799_v50 = vand.u32 4294901760, %v8102_v14 }
  0x75   : > { %v1448_v1 = vsub.f32 %v8078_v34, %v8792_v37  ;;  %v8150_v52 = vpack.c.bf16 %v1435_v20, %v1428_v30  ;;  %v1554_v33 = vand.u32 4294901760, %v1553_v63  ;;  %v1561_v57 = vand.u32 4294901760, %v1560_v59  ;;  %v8159_v37 = vld [vmem:[%s8732_s1 + $0x140] sm:$0xff] }
  0x76   : > { %6947 = vmatpush3.bf16.msra.mxu0 %v8003_v28  ;;  %8898 = vst [vmem:[#allocation6_spill] sm:$0xff] %v8138_v21  ;;  %v1441_v28 = vsub.f32 %v8076_v38, %v8791_v54  ;;  %v1369_v54 = vand.u32 4294901760, %v370_v2  ;;  %v1372_v30 = vand.u32 4294901760, %v371_v27  ;;  %v8798_v59 = vand.u32 4294901760, %v8117_v58 }
  0x77   : > { %6971 = vmatpush3.bf16.msra.mxu1 %v7579_v16  ;;  %6949 = vmatprep.subr.bf16.mxu0 %v8009_v44  ;;  %v8152_v16 = vsub.f32 %v369_v9, %v1366_v3  ;;  %v8800_v44 = vand.u32 4294901760, %v8092_v42  ;;  %v8797_v9 = vand.u32 4294901760, %v8115_v45  ;;  %v8168_v3 = vpack.c.bf16 %v1318_v48, %v1315_v56 }
  0x78   : > { %6973 = vmatprep.subr.bf16.mxu1 %v7597_v49  ;;  %v8164_v49 = vld [vmem:[%s8732_s1 + $0x148] sm:$0xff]  ;;  %v8802_v20 = vand.u32 4294901760, %v8134_v12  ;;  %v8174_v63 = vsub.f32 %v352_v23, %v1315_v56  ;;  %v8176_v31 = vsub.f32 %v353_v29, %v1318_v48  ;;  %v1442_v39 = vand.u32 4294901760, %v1441_v28 }
  0x79   : > { %8899 = vst [vmem:[#allocation8_spill] sm:$0xff] %v8152_v16  ;;  %8900 = vst [vmem:[#allocation7_spill] sm:$0xff] %v8168_v3  ;;  %v1449_v10 = vand.u32 4294901760, %v1448_v1  ;;  %v1574_v7 = vsub.f32 %v8102_v14, %v8799_v50  ;;  %v8187_v23 = vpack.c.bf16 %v1561_v57, %v1554_v33  ;;  %v1455_v29 = vsub.f32 %v8115_v45, %v8797_v9  ;;  %v373_v57 = vld [vmem:[%s8732_s1 + $0x1d8] sm:$0xff] }
  0x7a   : > { %6951 = vmatpush3.bf16.msra.mxu0 %v8023_v6  ;;  %8901 = vst [vmem:[#allocation10_spill] sm:$0xff] %v8174_v63  ;;  %8902 = vst [vmem:[#allocation11_spill] sm:$0xff] %v8176_v31  ;;  %v1567_v6 = vsub.f32 %v8092_v42, %v8800_v44  ;;  %v8803_v56 = vand.u32 4294901760, %v8119_v8  ;;  %v8806_v48 = vand.u32 4294901760, %v8152_v16  ;;  %v8198_v28 = vpack.c.bf16 %v1372_v30, %v1369_v54 }
  0x7b   : > { %6975 = vmatpush3.bf16.msra.mxu1 %v7621_v4  ;;  %6953 = vmatprep.subr.bf16.mxu0 %v8029_v5  ;;  %v1321_v4 = vand.u32 4294901760, %v8159_v37  ;;  %v1324_v5 = vand.u32 4294901760, %v8164_v49  ;;  %v8200_v1 = vsub.f32 %v370_v2, %v1369_v54  ;;  %v1462_v33 = vsub.f32 %v8117_v58, %v8798_v59  ;;  %v356_v2 = vld [vmem:[%s8732_s1 + $0x150] sm:$0xff]  ;;  %v357_v59 = vld [vmem:[%s8732_s1 + $0x158] sm:$0xff] }
  0x7c   : > { %6977 = vmatprep.subr.bf16.mxu1 %v8872_v19  ;;  %v372_v19 = vld [vmem:[%s8732_s1 + $0x1d0] sm:$0xff]  ;;  %8903 = vst [vmem:[#allocation12_spill] sm:$0xff] %v8198_v28  ;;  %v1395_v9 = vsub.f32 %v8134_v12, %v8802_v20  ;;  %v8215_v54 = vsub.f32 %v371_v27, %v1372_v30  ;;  %v1575_v43 = vand.u32 4294901760, %v1574_v7  ;;  %v1456_v27 = vand.u32 4294901760, %v1455_v29 }
  0x7d   : > { %v1378_v30 = vand.u32 4294901760, %v373_v57  ;;  %v1581_v20 = vsub.f32 %v8119_v8, %v8803_v56  ;;  %v1588_v50 = vsub.f32 %v8152_v16, %v8806_v48  ;;  %v1327_v7 = vand.u32 4294901760, %v356_v2 }
  0x7e   : > { %6955 = vmatpush3.bf16.msra.mxu0 %v8040_v36  ;;  %v8213_v36 = vpack.c.bf16 %v1449_v10, %v1442_v39  ;;  %v8226_v10 = vpack.c.bf16 %v1324_v5, %v1321_v4  ;;  %v1375_v39 = vand.u32 4294901760, %v372_v19  ;;  %v1396_v44 = vand.u32 4294901760, %v1395_v9  ;;  %v375_v9 = vld [vmem:[%s8732_s1 + $0x1e8] sm:$0xff] }
  0x7f   : > { %6979 = vmatpush3.bf16.msra.mxu1 %v8873_v25  ;;  %6989 = vmatprep.subr.bf16.mxu0 %v8042_v35  ;;  %v1568_v25 = vand.u32 4294901760, %v1567_v6  ;;  %v1330_v6 = vand.u32 4294901760, %v357_v59  ;;  %v8905_v29 = vand.u32 4294901760, %v8174_v63  ;;  %v8906_v8 = vand.u32 4294901760, %v8176_v31 }
  0x80   : > { %6981 = vmatprep.subr.bf16.mxu1 %v8874_v40  ;;  %8904 = vst [vmem:[#allocation13_spill] sm:$0xff] %v8226_v10  ;;  %v1463_v40 = vand.u32 4294901760, %v1462_v33  ;;  %v8267_v16 = vsub.f32 %v373_v57, %v1378_v30  ;;  %v1589_v33 = vand.u32 4294901760, %v1588_v50 }
  0x81   : > { %1173 = vmatmul.mubr.f32.vlgmr.msra.gmra.mrb[8].mxu0 %v7775_v24  ;;  %v1469_v56 = vsub.f32 %v8174_v63, %v8905_v29  ;;  %v1476_v48 = vsub.f32 %v8176_v31, %v8906_v8  ;;  %v8257_v29 = vsub.f32 %v8159_v37, %v1321_v4  ;;  %v8260_v8 = vsub.f32 %v8164_v49, %v1324_v5 }
  0x82   : > { %6991 = vmatpush3.bf16.msra.mxu0 %v8046_v26  ;;  %1178 = vmatprep.mubr.f32.mxu0 %v7829_v61  ;;  %v374_v26 = vld [vmem:[%s8732_s1 + $0x1e0] sm:$0xff]  ;;  %v8262_v31 = vsub.f32 %v372_v19, %v1375_v39  ;;  %v8265_v63 = vpack.c.bf16 %v1378_v30, %v1375_v39  ;;  %v8276_v37 = vpack.c.bf16 %v1463_v40, %v1456_v27  ;;  %v1384_v5 = vand.u32 4294901760, %v375_v9 }
  0x83   : > { %6983 = vmatpush3.bf16.msra.mxu1 %v8876_v18  ;;  %6993 = vmatprep.subr.bf16.mxu0 %v8061_v55  ;;  %v8254_v55 = vpack.c.bf16 %v1575_v43, %v1568_v25  ;;  %v1582_v18 = vand.u32 4294901760, %v1581_v20  ;;  %v359_v43 = vld [vmem:[%s8732_s1 + $0x168] sm:$0xff]  ;;  %v8278_v49 = vpack.c.bf16 %v1330_v6, %v1327_v7  ;;  %v1381_v4 = vand.u32 4294901760, %v374_v26 }
  0x84   : > { %6985 = vmatprep.subr.bf16.mxu1 %v8877_v53  ;;  %8907 = vst [vmem:[#allocation14_spill] sm:$0xff] %v8265_v63  ;;  %v358_v53 = vld [vmem:[%s8732_s1 + $0x160] sm:$0xff]  ;;  %v1470_v50 = vand.u32 4294901760, %v1469_v56  ;;  %v1477_v20 = vand.u32 4294901760, %v1476_v48  ;;  %v8908_v19 = vand.u32 4294901760, %v8200_v1  ;;  %v8909_v25 = vand.u32 4294901760, %v8215_v54 }
  0x85   : > { %1180 = vmatmul.mubr.f32.gmra.mrb[10].mxu0 %v7839_v13  ;;  %v8289_v27 = vsub.f32 %v356_v2, %v1327_v7  ;;  %v1336_v30 = vand.u32 4294901760, %v359_v43  ;;  %v8295_v56 = vld [vmem:[%s8732_s1 + $0x1f0] sm:$0xff]  ;;  %v8297_v48 = vpack.c.bf16 %v1589_v33, %v1582_v18  ;;  %v8299_v40 = vsub.f32 %v357_v59, %v1330_v6 }
  0x86   : > { %6995 = vmatpush3.bf16.msra.mxu0 %v8074_v11  ;;  %1397 = vmatprep.mubr.f32.mxu0 %v1396_v44  ;;  %v1595_v57 = vsub.f32 %v8200_v1, %v8908_v19  ;;  %v1602_v39 = vsub.f32 %v8215_v54, %v8909_v25  ;;  %v1333_v44 = vand.u32 4294901760, %v358_v53  ;;  %v8310_v7 = vpack.c.bf16 %v1384_v5, %v1381_v4  ;;  %v308_v33 = vld [vmem:[%s7734_s15 + $0x10] sm:$0xff] }
  0x87   : > { %6987 = vmatpush3.bf16.msra.mxu1 %v8879_v15  ;;  %6997 = vmatprep.subr.bf16.mxu0 %v8097_v0  ;;  %8910 = vst [vmem:[#allocation15_spill] sm:$0xff] %v8299_v40  ;;  %v8312_v18 = vsub.f32 %v374_v26, %v1381_v4  ;;  %v8314_v59 = vsub.f32 %v375_v9, %v1384_v5  ;;  %v8823_v6 = vand.u32 4294901760, %v8267_v16  ;;  %v313_v15 = vld [vmem:[%s7734_s15 + $0x38] sm:$0xff]  ;;  %v8337_v5 = vld [vmem:[%s8732_s1 + $0x170] sm:$0xff] }
  0x88   : > { %7021 = vmatprep.subr.bf16.mxu1 %v8128_v62  ;;  %v8305_v62 = vld [vmem:[%s8732_s1 + $0x1f8] sm:$0xff]  ;;  %v8320_v25 = vpack.c.bf16 %v1477_v20, %v1470_v50  ;;  %v1596_v2 = vand.u32 4294901760, %v1595_v57  ;;  %v1603_v19 = vand.u32 4294901760, %v1602_v39  ;;  %v8326_v26 = vpack.c.bf16 %v1336_v30, %v1333_v44 }
  0x89   : > { %8911 = vst [vmem:[#allocation16_spill] sm:$0xff] %v8312_v18  ;;  %v8328_v9 = vsub.f32 %v358_v53, %v1333_v44  ;;  %v1390_v4 = vand.u32 4294901760, %v8305_v62  ;;  %v8344_v50 = vsub.f32 %v359_v43, %v1336_v30  ;;  %v8913_v53 = vand.u32 4294901760, %v8260_v8 }
  0x8a   : > { %1284 = vmatmul.mubr.f32.vlgmr.msra.gmra.mrb[8].mxu1 %v7775_v24  ;;  %6999 = vmatpush3.bf16.msra.mxu0 %v8113_v22  ;;  %v1387_v24 = vand.u32 4294901760, %v8295_v56  ;;  %v8914_v57 = vand.u32 4294901760, %v8262_v31  ;;  %v8352_v44 = vand.u32 4294901760, %v308_v33  ;;  %v8916_v43 = vand.u32 4294901760, %v8299_v40 }
  0x8b   : > { %7023 = vmatpush3.bf16.msra.mxu1 %v8150_v52  ;;  %1289 = vmatprep.mubr.f32.mxu1 %v7829_v61  ;;  %v8912_v52 = vand.u32 4294901760, %v8257_v29  ;;  %v1490_v20 = vsub.f32 %v8260_v8, %v8913_v53  ;;  %v312_v53 = vld [vmem:[%s7734_s15 + $0x30] sm:$0xff]  ;;  %v8373_v30 = vsub.f32 %v8305_v62, %v1390_v4 }
  0x8c   : > { %7001 = vmatprep.subr.bf16.mxu0 %v8138_v21  ;;  %7025 = vmatprep.subr.bf16.mxu1 %v8187_v23  ;;  %v8342_v23 = vld [vmem:[%s8732_s1 + $0x178] sm:$0xff]  ;;  %v1609_v39 = vsub.f32 %v8262_v31, %v8914_v57  ;;  %v8361_v21 = vand.u32 4294901760, %v313_v15  ;;  %v7036_v57 = vpack.c.bf16 %v1603_v19, %v1596_v2 }
  0x8d   : > { %v1483_v61 = vsub.f32 %v8257_v29, %v8912_v52  ;;  %v1616_v52 = vsub.f32 %v8267_v16, %v8823_v6  ;;  %v1342_v22 = vand.u32 4294901760, %v8342_v23  ;;  %v1491_v19 = vand.u32 4294901760, %v1490_v20 }
  0x8e   : > { %1291 = vmatmul.mubr.f32.gmra.mrb[10].mxu1 %v7839_v13  ;;  %7003 = vmatpush3.bf16.msra.mxu0 %v8168_v3  ;;  %v8367_v13 = vsub.f32 %v8295_v56, %v1387_v24  ;;  %v1339_v3 = vand.u32 4294901760, %v8337_v5  ;;  %v1610_v2 = vand.u32 4294901760, %v1609_v39  ;;  %v8379_v56 = vsub.f32 %v308_v33, %v8352_v44 }
  0x8f   : > { %7027 = vmatpush3.bf16.msra.mxu1 %v8213_v36  ;;  %7005 = vmatprep.subr.bf16.mxu0 %v8198_v28  ;;  %v1484_v6 = vand.u32 4294901760, %v1483_v61  ;;  %v8381_v28 = vand.u32 4294901760, %v312_v53  ;;  %v8915_v61 = vand.u32 4294901760, %v8289_v27  ;;  %v1504_v36 = vsub.f32 %v8299_v40, %v8916_v43 }
  0x90   : > { %7029 = vmatprep.subr.bf16.mxu1 %v8254_v55  ;;  %1648 = vmatprep.mubr.f32.mxu1 %v8099_v60  ;;  %v1617_v55 = vand.u32 4294901760, %v1616_v52  ;;  %v8391_v60 = vsub.f32 %v313_v15, %v8361_v21  ;;  %v8396_v33 = vsub.f32 %v8337_v5, %v1339_v3  ;;  %v8399_v20 = vsub.f32 %v8342_v23, %v1342_v22 }
  0x91   : > { %v1497_v62 = vsub.f32 %v8289_v27, %v8915_v61  ;;  %v8917_v43 = vand.u32 4294901760, %v8312_v18  ;;  %v8837_v5 = vand.u32 4294901760, %v8367_v13  ;;  %v7038_v23 = vpack.c.bf16 %v1491_v19, %v1484_v6 }
  0x92   : > { %7007 = vmatpush3.bf16.msra.mxu0 %v8226_v10  ;;  %v8412_v10 = vpack.c.bf16 %v1390_v4, %v1387_v24  ;;  %v8838_v39 = vand.u32 4294901760, %v8379_v56  ;;  %v8416_v52 = vsub.f32 %v312_v53, %v8381_v28  ;;  %v8839_v40 = vand.u32 4294901760, %v8391_v60 }
  0x93   : > { %7031 = vmatpush3.bf16.msra.mxu1 %v8276_v37  ;;  %7009 = vmatprep.subr.bf16.mxu0 %v8265_v63  ;;  %v1623_v15 = vsub.f32 %v8312_v18, %v8917_v43  ;;  %v8918_v37 = vand.u32 4294901760, %v8314_v59  ;;  %v8836_v63 = vand.u32 4294901760, %v8373_v30  ;;  %v1498_v43 = vand.u32 4294901760, %v1497_v62 }
  0x94   : > { %7033 = vmatprep.subr.bf16.mxu1 %v8297_v48  ;;  %v7040_v48 = vpack.c.bf16 %v1617_v55, %v1610_v2  ;;  %v1505_v18 = vand.u32 4294901760, %v1504_v36  ;;  %v8919_v6 = vand.u32 4294901760, %v8328_v9  ;;  %v8920_v4 = vand.u32 4294901760, %v8344_v50 }
  0x95   : > { %v1630_v61 = vsub.f32 %v8314_v59, %v8918_v37  ;;  %v8840_v19 = vand.u32 4294901760, %v8396_v33  ;;  %v8841_v2 = vand.u32 4294901760, %v8399_v20  ;;  %v1624_v36 = vand.u32 4294901760, %v1623_v15 }
  0x96   : > { %7011 = vmatpush3.bf16.msra.mxu0 %v8278_v49  ;;  %v1511_v24 = vsub.f32 %v8328_v9, %v8919_v6  ;;  %v1518_v53 = vsub.f32 %v8344_v50, %v8920_v4  ;;  %v1644_v62 = vsub.f32 %v8373_v30, %v8836_v63  ;;  %v1401_v37 = vsub.f32 %v8379_v56, %v8838_v39 }
  0x97   : > { %7035 = vmatpush3.bf16.msra.mxu1 %v8320_v25  ;;  %7013 = vmatprep.subr.bf16.mxu0 %v8310_v7  ;;  %v1631_v55 = vand.u32 4294901760, %v1630_v61  ;;  %v1637_v25 = vsub.f32 %v8367_v13, %v8837_v5  ;;  %v8441_v4 = vpack.c.bf16 %v1342_v22, %v1339_v3  ;;  %v7052_v15 = vpack.c.bf16 %v7971_v47, %v7969_v32 }
  0x98   : > { %7037 = vmatprep.subr.bf16.mxu1 %v7036_v57  ;;  %v7042_v57 = vpack.c.bf16 %v1505_v18, %v1498_v43  ;;  %v1410_v61 = vsub.f32 %v8391_v60, %v8839_v40  ;;  %v1512_v63 = vand.u32 4294901760, %v1511_v24  ;;  %v1519_v5 = vand.u32 4294901760, %v1518_v53 }
  0x99   : > { %v1525_v39 = vsub.f32 %v8396_v33, %v8840_v19  ;;  %v1532_v22 = vsub.f32 %v8399_v20, %v8841_v2  ;;  %v7044_v3 = vpack.c.bf16 %v1631_v55, %v1624_v36  ;;  %v1638_v18 = vand.u32 4294901760, %v1637_v25 }
  0x9a   : > { %7015 = vmatpush3.bf16.msra.mxu0 %v8326_v26  ;;  %v1645_v43 = vand.u32 4294901760, %v1644_v62  ;;  %v1402_v6 = vand.u32 4294901760, %v1401_v37  ;;  %v8921_v40 = vand.u32 4294901760, %v8416_v52  ;;  %v7054_v24 = vpack.c.bf16 %v7984_v17, %v7982_v41 }
  0x9b   : > { %7039 = vmatpush3.bf16.msra.mxu1 %v7038_v23  ;;  %7017 = vmatprep.subr.bf16.mxu0 %v8412_v10  ;;  %v1411_v53 = vand.u32 4294901760, %v1410_v61  ;;  %v7046_v19 = vpack.c.bf16 %v1519_v5, %v1512_v63  ;;  %v1526_v36 = vand.u32 4294901760, %v1525_v39  ;;  %v1533_v55 = vand.u32 4294901760, %v1532_v22  ;;  %v8922_v5 = vld [vmem:[#allocation5_spill] sm:$0xff]  ;;  %v8926_v22 = vld [vmem:[#allocation2_spill] sm:$0xff] }
  0x9c   : > { %7041 = vmatprep.subr.bf16.mxu1 %v7040_v48  ;;  %v1416_v23 = vsub.f32 %v8416_v52, %v8921_v40  ;;  %v7056_v48 = vpack.c.bf16 %v8050_v51, %v8048_v46  ;;  %v7048_v25 = vpack.c.bf16 %v1645_v43, %v1638_v18  ;;  %v7058_v40 = vpack.c.bf16 %v8078_v34, %v8076_v38  ;;  %v8927_v18 = vld [vmem:[#allocation3_spill] sm:$0xff] }
  0x9d   : > { %v7050_v37 = vpack.c.bf16 %v1533_v55, %v1526_v36  ;;  %v7060_v63 = vpack.c.bf16 %v8102_v14, %v8092_v42  ;;  %v7062_v39 = vpack.c.bf16 %v8117_v58, %v8115_v45  ;;  %v7070_v43 = vpack.c.bf16 %v8260_v8, %v8257_v29  ;;  %v8930_v36 = vld [vmem:[#allocation9_spill] sm:$0xff]  ;;  %v8931_v55 = vld [vmem:[#allocation16_spill] sm:$0xff] }
  0x9e   : > { %7019 = vmatpush3.bf16.msra.mxu0 %v8441_v4  ;;  %v1417_v62 = vand.u32 4294901760, %v1416_v23  ;;  %v7072_v23 = vpack.c.bf16 %v8267_v16, %v8262_v31 }
  0x9f   : > { %7043 = vmatpush3.bf16.msra.mxu1 %v7042_v57  ;;  %7053 = vmatprep.subr.bf16.mxu0 %v7052_v15  ;;  %v8924_v57 = vld [vmem:[#allocation10_spill] sm:$0xff]  ;;  %v8925_v15 = vld [vmem:[#allocation11_spill] sm:$0xff] }
  0xa0   : > { %7045 = vmatprep.subr.bf16.mxu1 %v7044_v3  ;;  %v7066_v61 = vpack.c.bf16 %v8925_v15, %v8924_v57  ;;  %v7068_v3 = vpack.c.bf16 %v8215_v54, %v8200_v1 }
  0xa1   : > { %1403 = vmatmul.mubr.f32.vlgmr.msra.gmra.mrb[12].mxu0 %v1402_v6  ;;  %v8923_v6 = vld [vmem:[#allocation8_spill] sm:$0xff] }
  0xa2   : > { %7055 = vmatpush3.bf16.msra.mxu0 %v7054_v24  ;;  %1412 = vmatprep.mubr.f32.mxu0 %v1411_v53  ;;  %v8928_v24 = vand.u32 4294901760, %v8134_v12  ;;  %v8929_v53 = vld [vmem:[#allocation15_spill] sm:$0xff] }
  0xa3   : > { %7047 = vmatpush3.bf16.msra.mxu1 %v7046_v19  ;;  %7057 = vmatprep.subr.bf16.mxu0 %v7056_v48  ;;  %v7064_v19 = vpack.c.bf16 %v8923_v6, %v8922_v5  ;;  %v7074_v48 = vpack.c.bf16 %v8929_v53, %v8289_v27 }
  0xa4   : > { %7049 = vmatprep.subr.bf16.mxu1 %v7048_v25  ;;  %v7076_v25 = vpack.c.bf16 %v8314_v59, %v8931_v55 }
  0xa5   : > { %1418 = vmatmul.mubr.f32.gmra.mrb[14].mxu0 %v1417_v62  ;;  %v8932_v62 = vld [vmem:[#allocation6_spill] sm:$0xff] }
  0xa6   : > { %7059 = vmatpush3.bf16.msra.mxu0 %v7058_v40  ;;  %1792 = vmatprep.mubr.f32.mxu0 %v8134_v12  ;;  %v7078_v40 = vpack.c.bf16 %v8344_v50, %v8328_v9  ;;  %v7080_v12 = vpack.c.bf16 %v8373_v30, %v8367_v13 }
  0xa7   : > { %7051 = vmatpush3.bf16.msra.mxu1 %v7050_v37  ;;  %7061 = vmatprep.subr.bf16.mxu0 %v7060_v63  ;;  %v8933_v37 = vld [vmem:[#allocation7_spill] sm:$0xff]  ;;  %v8934_v63 = vld [vmem:[#allocation12_spill] sm:$0xff] }
  0xa8   : > { %7085 = vmatprep.subr.bf16.mxu1 %v8042_v35 }
  0xaa   : > { %1650 = vmatmul.mubr.f32.vlgmr.msra.gmra.mrb[12].mxu1 %v8352_v44  ;;  %7063 = vmatpush3.bf16.msra.mxu0 %v7062_v39  ;;  %v7082_v39 = vpack.c.bf16 %v8399_v20, %v8396_v33 }
  0xab   : > { %7087 = vmatpush3.bf16.msra.mxu1 %v8926_v22  ;;  %1655 = vmatprep.mubr.f32.mxu1 %v8361_v21 }
  0xac   : > { %7065 = vmatprep.subr.bf16.mxu0 %v7064_v19  ;;  %7089 = vmatprep.subr.bf16.mxu1 %v8927_v18  ;;  %v8935_v19 = vld [vmem:[#allocation13_spill] sm:$0xff] }
  0xae   : > { %1657 = vmatmul.mubr.f32.gmra.mrb[14].mxu1 %v8381_v28  ;;  %7067 = vmatpush3.bf16.msra.mxu0 %v7066_v61  ;;  %v8936_v61 = vand.u32 4294901760, %v7969_v32  ;;  %v8943_v32 = vand.u32 4294901760, %v8076_v38  ;;  %v8948_v38 = vand.u32 4294901760, %v8117_v58  ;;  %v8954_v58 = vand.u32 4294901760, %v8925_v15 }
  0xaf   : > { %7091 = vmatpush3.bf16.msra.mxu1 %v8074_v11  ;;  %7069 = vmatprep.subr.bf16.mxu0 %v7068_v3  ;;  %v8937_v3 = vand.u32 4294901760, %v7971_v47  ;;  %v8944_v47 = vand.u32 4294901760, %v8078_v34  ;;  %v8949_v34 = vld [vmem:[#allocation4_spill] sm:$0xff]  ;;  %v8960_v15 = vand.u32 4294901760, %v8260_v8 }
  0xb0   : > { %7093 = vmatprep.subr.bf16.mxu1 %v8097_v0  ;;  %1908 = vmatprep.mubr.f32.mxu1 %v8928_v24  ;;  %v8939_v24 = vand.u32 4294901760, %v7982_v41 }
  0xb1   : > { %v7122_v41 = vpack.c.bf16 %v8944_v47, %v8943_v32 }
  0xb2   : > { %7071 = vmatpush3.bf16.msra.mxu0 %v7070_v43  ;;  %v7116_v43 = vpack.c.bf16 %v8937_v3, %v8936_v61  ;;  %v8952_v3 = vand.u32 4294901760, %v8379_v56 }
  0xb3   : > { %7095 = vmatpush3.bf16.msra.mxu1 %v8930_v36  ;;  %7073 = vmatprep.subr.bf16.mxu0 %v7072_v23  ;;  %v8938_v23 = vld [vmem:[#allocation14_spill] sm:$0xff] }
  0xb4   : > { %7097 = vmatprep.subr.bf16.mxu1 %v8932_v62 }
  0xb6   : > { %7075 = vmatpush3.bf16.msra.mxu0 %v7074_v48  ;;  %v8940_v48 = vand.u32 4294901760, %v7984_v17  ;;  %v8945_v17 = vand.u32 4294901760, %v8092_v42  ;;  %v8950_v42 = vand.u32 4294901760, %v8922_v5  ;;  %v8957_v5 = vand.u32 4294901760, %v8215_v54 }
  0xb7   : > { %7099 = vmatpush3.bf16.msra.mxu1 %v8933_v37  ;;  %7077 = vmatprep.subr.bf16.mxu0 %v7076_v25 }
  0xb8   : > { %7101 = vmatprep.subr.bf16.mxu1 %v8934_v63  ;;  %v7118_v25 = vpack.c.bf16 %v8940_v48, %v8939_v24  ;;  %v8955_v24 = vand.u32 4294901760, %v8391_v60 }
  0xba   : > { %7079 = vmatpush3.bf16.msra.mxu0 %v7078_v40  ;;  %v8941_v40 = vand.u32 4294901760, %v8048_v46  ;;  %v8946_v46 = vand.u32 4294901760, %v8102_v14  ;;  %v8951_v14 = vand.u32 4294901760, %v8923_v6 }
  0xbb   : > { %7103 = vmatpush3.bf16.msra.mxu1 %v8935_v19  ;;  %7081 = vmatprep.subr.bf16.mxu0 %v7080_v12  ;;  %v8942_v12 = vand.u32 4294901760, %v8050_v51 }
  0xbc   : > { %7105 = vmatprep.subr.bf16.mxu1 %v8938_v23  ;;  %v7124_v51 = vpack.c.bf16 %v8946_v46, %v8945_v17 }
  0xbd   : > { %v7120_v2 = vpack.c.bf16 %v8942_v12, %v8941_v40 }
  0xbe   : > { %7083 = vmatpush3.bf16.msra.mxu0 %v7082_v39  ;;  %v8947_v39 = vand.u32 4294901760, %v8115_v45  ;;  %v8953_v45 = vand.u32 4294901760, %v8924_v57  ;;  %v8959_v57 = vand.u32 4294901760, %v8257_v29  ;;  %v8964_v29 = vand.u32 4294901760, %v8929_v53 }
  0xbf   : > { %7107 = vmatpush3.bf16.msra.mxu1 %v8278_v49  ;;  %7117 = vmatprep.subr.bf16.mxu0 %v7116_v43  ;;  %v8970_v53 = vand.u32 4294901760, %v8373_v30 }
  0xc0   : > { %7109 = vmatprep.subr.bf16.mxu1 %v8310_v7  ;;  %v7126_v61 = vpack.c.bf16 %v8948_v38, %v8947_v39  ;;  %v7130_v43 = vpack.c.bf16 %v8954_v58, %v8953_v45 }
  0xc1   : > { %1795 = vmatmul.mubr.f32.vlgmr.msra.gmra.mrb[16].mxu0 %v8379_v56  ;;  %v8958_v56 = vand.u32 4294901760, %v8416_v52 }
  0xc2   : > { %7119 = vmatpush3.bf16.msra.mxu0 %v7118_v25  ;;  %1801 = vmatprep.mubr.f32.mxu0 %v8391_v60  ;;  %v8961_v60 = vand.u32 4294901760, %v8262_v31  ;;  %v8966_v31 = vand.u32 4294901760, %v8314_v59  ;;  %v8971_v59 = vand.u32 4294901760, %v8396_v33 }
  0xc3   : > { %7111 = vmatpush3.bf16.msra.mxu1 %v8326_v26  ;;  %7121 = vmatprep.subr.bf16.mxu0 %v7120_v2  ;;  %v7128_v2 = vpack.c.bf16 %v8951_v14, %v8950_v42 }
  0xc4   : > { %7113 = vmatprep.subr.bf16.mxu1 %v8412_v10 }
  0xc5   : > { %1804 = vmatmul.mubr.f32.gmra.mrb[18].mxu0 %v8416_v52  ;;  %v8963_v52 = vand.u32 4294901760, %v8289_v27  ;;  %v8969_v27 = vand.u32 4294901760, %v8367_v13 }
  0xc6   : > { %7123 = vmatpush3.bf16.msra.mxu0 %v7122_v41  ;;  %2089 = vmatprep.mubr.f32.mxu0 %v8949_v34 }
  0xc7   : > { %7115 = vmatpush3.bf16.msra.mxu1 %v8441_v4  ;;  %7125 = vmatprep.subr.bf16.mxu0 %v7124_v51 }
  0xc8   : > { %7149 = vmatprep.subr.bf16.mxu1 %v8042_v35  ;;  %v8956_v35 = vand.u32 4294901760, %v8200_v1  ;;  %v8962_v1 = vand.u32 4294901760, %v8267_v16  ;;  %v8968_v16 = vand.u32 4294901760, %v8344_v50 }
  0xca   : > { %1912 = vmatmul.mubr.f32.vlgmr.msra.gmra.mrb[16].mxu1 %v8952_v3  ;;  %7127 = vmatpush3.bf16.msra.mxu0 %v7126_v61  ;;  %v7132_v6 = vpack.c.bf16 %v8957_v5, %v8956_v35  ;;  %v7136_v54 = vpack.c.bf16 %v8962_v1, %v8961_v60 }
  0xcb   : > { %7151 = vmatpush3.bf16.msra.mxu1 %v8926_v22  ;;  %1919 = vmatprep.mubr.f32.mxu1 %v8955_v24  ;;  %v7134_v22 = vpack.c.bf16 %v8960_v15, %v8959_v57 }
  0xcc   : > { %7129 = vmatprep.subr.bf16.mxu0 %v7128_v2  ;;  %7153 = vmatprep.subr.bf16.mxu1 %v8927_v18  ;;  %v7138_v18 = vpack.c.bf16 %v8964_v29, %v8963_v52 }
  0xce   : > { %1923 = vmatmul.mubr.f32.gmra.mrb[18].mxu1 %v8958_v56  ;;  %7131 = vmatpush3.bf16.msra.mxu0 %v7130_v43 }
  0xcf   : > { %7155 = vmatpush3.bf16.msra.mxu1 %v8074_v11  ;;  %7133 = vmatprep.subr.bf16.mxu0 %v7132_v6  ;;  %v8965_v11 = vand.u32 4294901760, %v8931_v55  ;;  %v8972_v55 = vand.u32 4294901760, %v8399_v20 }
  0xd0   : > { %7157 = vmatprep.subr.bf16.mxu1 %v8097_v0  ;;  %2200 = vmatprep.mubr.f32.mxu1 %v8949_v34  ;;  %v8967_v0 = vand.u32 4294901760, %v8328_v9  ;;  %v2236_v34 = vld [vmem:[%s8735_s4] sm:$0xff] }
  0xd1   : > { %v7140_v8 = vpack.c.bf16 %v8966_v31, %v8965_v11  ;;  %v8611_v42 = vand.u32 4294901760, %v2236_v34 }
  0xd2   : > { %7135 = vmatpush3.bf16.msra.mxu0 %v7134_v22  ;;  %v7142_v48 = vpack.c.bf16 %v8968_v16, %v8967_v0 }
  0xd3   : > { %7159 = vmatpush3.bf16.msra.mxu1 %v8930_v36  ;;  %7137 = vmatprep.subr.bf16.mxu0 %v7136_v54  ;;  %v7144_v36 = vpack.c.bf16 %v8970_v53, %v8969_v27  ;;  %v8618_v43 = vsub.f32 %v2236_v34, %v8611_v42 }
  0xd4   : > { %7161 = vmatprep.subr.bf16.mxu1 %v8932_v62  ;;  %v7146_v62 = vpack.c.bf16 %v8972_v55, %v8971_v59 }
  0xd5   : > { %v8621_v5 = vand.u32 4294901760, %v8618_v43 }
  0xd6   : > { %7139 = vmatpush3.bf16.msra.mxu0 %v7138_v18 }
  0xd7   : > { %7163 = vmatpush3.bf16.msra.mxu1 %v8933_v37  ;;  %7141 = vmatprep.subr.bf16.mxu0 %v7140_v8  ;;  %v2334_v56 = vsub.f32 %v8618_v43, %v8621_v5 }
  0xd8   : > { %7165 = vmatprep.subr.bf16.mxu1 %v8934_v63 }
  0xd9   : > { %v8626_v22 = vand.u32 4294901760, %v2334_v56 }
  0xda   : > { %7143 = vmatpush3.bf16.msra.mxu0 %v7142_v48 }
  0xdb   : > { %7167 = vmatpush3.bf16.msra.mxu1 %v8935_v19  ;;  %7145 = vmatprep.subr.bf16.mxu0 %v7144_v36 }
  0xdc   : > { %7169 = vmatprep.subr.bf16.mxu1 %v8938_v23 }
  0xde   : > { %7147 = vmatpush3.bf16.msra.mxu0 %v7146_v62 }
  0xdf   : > { %7171 = vmatpush3.bf16.msra.mxu1 %v8278_v49  ;;  %6553 = vmatprep.subr.mxu0 %v8611_v42 }
  0xe0   : > { %7173 = vmatprep.subr.bf16.mxu1 %v8310_v7 }
  0xe1   : > { %2091 = vmatmul.mubr.f32.vlgmr.msra.gmra.mrb[20].mxu0 %v8352_v44 }
  0xe2   : > { %2096 = vmatprep.mubr.f32.mxu0 %v8361_v21  ;;  %6554 = vmatpush3.msra.mxu0 %v8611_v42 }
  0xe3   : > { %7175 = vmatpush3.bf16.msra.mxu1 %v8326_v26  ;;  %6558 = vmatprep.subr.mxu0 %v8621_v5 }
  0xe4   : > { %7177 = vmatprep.subr.bf16.mxu1 %v8412_v10 }
  0xe5   : > { %2098 = vmatmul.mubr.f32.gmra.mrb[22].mxu0 %v8381_v28 }
  0xe7   : > { %7179 = vmatpush3.bf16.msra.mxu1 %v8441_v4 }
  0xe8   : > { %6538 = vmatprep.subr.mxu1 %v8611_v42 }
  0xea   : > { %2202 = vmatmul.mubr.f32.vlgmr.msra.gmra.mrb[20].mxu1 %v8352_v44 }
  0xeb   : > { %2207 = vmatprep.mubr.f32.mxu1 %v8361_v21  ;;  %6539 = vmatpush3.msra.mxu1 %v8611_v42 }
  0xec   : > { %6543 = vmatprep.subr.mxu1 %v8626_v22 }
  0xee   : > { %2209 = vmatmul.mubr.f32.gmra.mrb[22].mxu1 %v8381_v28 }
 0x114   : > { %v5964_v49 = vpop.f32.mrb[0].mxu0 }
 0x115   : > { %v5965_v7 = vpop.f32.mrb[1].mxu0 }
 0x116   : > { %v5966_v9 = vadd.f32 %v5965_v7, %v5964_v49 }
 0x11d   : > { %v6002_v50 = vpop.f32.mrb[0].mxu1 }
 0x11e   : > { %v6003_v30 = vpop.f32.mrb[1].mxu1 }
 0x11f   : > { %v6004_v13 = vadd.f32 %v6003_v30, %v6002_v50 }
 0x121   : > { %v734_v33 = vadd.f32 %v6004_v13, %v5966_v9  ;;  %v6005_v26 = vpop.f32.mrb[2].mxu1 }
 0x122   : > { %v6006_v20 = vpop.f32.mrb[3].mxu1 }
 0x123   : > { %v5967_v10 = vpop.f32.mrb[2].mxu0  ;;  %v6007_v37 = vadd.f32 %v6006_v20, %v6005_v26 }
 0x124   : > { %v5968_v63 = vpop.f32.mrb[3].mxu0 }
 0x125   : > { %v5969_v19 = vadd.f32 %v5968_v63, %v5967_v10 }
 0x127   : > { %v741_v4 = vadd.f32 %v6007_v37, %v5969_v19 }
 0x134   : > { %v6040_v23 = vpop.f32.mrb[4].mxu0 }
 0x135   : > { %v6041_v44 = vpop.f32.mrb[5].mxu0 }
 0x136   : > { %v6042_v25 = vadd.f32 %v6041_v44, %v6040_v23 }
 0x138   : > { %v879_v21 = vadd.f32 %v6042_v25, %v734_v33  ;;  %v6043_v40 = vpop.f32.mrb[6].mxu0 }
 0x139   : > { %v6044_v28 = vpop.f32.mrb[7].mxu0 }
 0x13a   : > { %v6045_v12 = vadd.f32 %v6044_v28, %v6043_v40 }
 0x13c   : > { %v888_v32 = vadd.f32 %v6045_v12, %v741_v4 }
 0x13d   : > { %v6078_v47 = vpop.f32.mrb[4].mxu1 }
 0x13e   : > { %v6079_v41 = vpop.f32.mrb[5].mxu1 }
 0x13f   : > { %v6080_v17 = vadd.f32 %v6079_v41, %v6078_v47 }
 0x141   : > { %v996_v46 = vadd.f32 %v6080_v17, %v879_v21  ;;  %v6081_v51 = vpop.f32.mrb[6].mxu1 }
 0x142   : > { %v6082_v39 = vpop.f32.mrb[7].mxu1 }
 0x143   : > { %v6083_v38 = vadd.f32 %v6082_v39, %v6081_v51 }
 0x145   : > { %v1007_v61 = vadd.f32 %v6083_v38, %v888_v32 }
 0x154   : > { %v6116_v14 = vpop.f32.mrb[8].mxu0 }
 0x155   : > { %v6117_v2 = vpop.f32.mrb[9].mxu0 }
 0x156   : > { %v6118_v3 = vadd.f32 %v6117_v2, %v6116_v14  ;;  %v5922_v14 = vld [vmem:[%s8733_s2] ss:$0 sm:$0xff] }
 0x158   : > { %v1175_v45 = vadd.f32 %v6118_v3, %v996_v46  ;;  %v6119_v58 = vpop.f32.mrb[10].mxu0 }
 0x159   : > { %v6120_v24 = vpop.f32.mrb[11].mxu0 }
 0x15a   : > { %v6121_v35 = vadd.f32 %v6120_v24, %v6119_v58 }
 0x15c   : > { %v1182_v6 = vadd.f32 %v6121_v35, %v1007_v61 }
 0x15d   : > { %v6154_v57 = vpop.f32.mrb[8].mxu1 }
 0x15e   : > { %v6155_v15 = vpop.f32.mrb[9].mxu1 }
 0x15f   : > { %v6156_v60 = vadd.f32 %v6155_v15, %v6154_v57 }
 0x161   : > { %v1286_v1 = vadd.f32 %v6156_v60, %v1175_v45  ;;  %v6157_v54 = vpop.f32.mrb[10].mxu1  ;;  %v5923_v45 = vld [vmem:[%s8734_s3] ss:$0 sm:$0xff] }
 0x162   : > { %v6158_v52 = vpop.f32.mrb[11].mxu1 }
 0x163   : > { %v6159_v29 = vadd.f32 %v6158_v52, %v6157_v54 }
 0x165   : > { %v1293_v18 = vadd.f32 %v6159_v29, %v1182_v6 }
 0x174   : > { %v6192_v11 = vpop.f32.mrb[12].mxu0 }
 0x175   : > { %v6193_v31 = vpop.f32.mrb[13].mxu0 }
 0x176   : > { %v6194_v8 = vadd.f32 %v6193_v31, %v6192_v11 }
 0x178   : > { %v1405_v0 = vadd.f32 %v6194_v8, %v1286_v1  ;;  %v6195_v16 = vpop.f32.mrb[14].mxu0 }
 0x179   : > { %v6196_v48 = vpop.f32.mrb[15].mxu0 }
 0x17a   : > { %v6197_v27 = vadd.f32 %v6196_v48, %v6195_v16 }
 0x17c   : > { %v1420_v53 = vadd.f32 %v6197_v27, %v1293_v18 }
 0x17d   : > { %v6230_v36 = vpop.f32.mrb[12].mxu1 }
 0x17e   : > { %v6231_v59 = vpop.f32.mrb[13].mxu1 }
 0x17f   : > { %v6232_v55 = vadd.f32 %v6231_v59, %v6230_v36 }
 0x181   : > { %v1652_v62 = vadd.f32 %v6232_v55, %v1405_v0  ;;  %v6233_v49 = vpop.f32.mrb[14].mxu1 }
 0x182   : > { %v6234_v7 = vpop.f32.mrb[15].mxu1 }
 0x183   : > { %v6235_v9 = vadd.f32 %v6234_v7, %v6233_v49 }
 0x185   : > { %v1659_v50 = vadd.f32 %v6235_v9, %v1420_v53 }
 0x194   : > { %v6268_v30 = vpop.f32.mrb[16].mxu0 }
 0x195   : > { %v6269_v13 = vpop.f32.mrb[17].mxu0 }
 0x196   : > { %v6270_v33 = vadd.f32 %v6269_v13, %v6268_v30 }
 0x198   : > { %v1797_v26 = vadd.f32 %v6270_v33, %v1652_v62  ;;  %v6271_v20 = vpop.f32.mrb[18].mxu0 }
 0x199   : > { %v6272_v10 = vpop.f32.mrb[19].mxu0 }
 0x19a   : > { %v6273_v37 = vadd.f32 %v6272_v10, %v6271_v20 }
 0x19c   : > { %v1806_v63 = vadd.f32 %v6273_v37, %v1659_v50 }
 0x19d   : > { %v6306_v19 = vpop.f32.mrb[16].mxu1 }
 0x19e   : > { %v6307_v4 = vpop.f32.mrb[17].mxu1 }
 0x19f   : > { %v6308_v23 = vadd.f32 %v6307_v4, %v6306_v19 }
 0x1a1   : > { %v1914_v44 = vadd.f32 %v6308_v23, %v1797_v26  ;;  %v6309_v25 = vpop.f32.mrb[18].mxu1 }
 0x1a2   : > { %v6310_v21 = vpop.f32.mrb[19].mxu1 }
 0x1a3   : > { %v6311_v40 = vadd.f32 %v6310_v21, %v6309_v25 }
 0x1a5   : > { %v1925_v28 = vadd.f32 %v6311_v40, %v1806_v63 }
 0x1b4   : > { %v6344_v12 = vpop.f32.mrb[20].mxu0 }
 0x1b5   : > { %v6345_v32 = vpop.f32.mrb[21].mxu0 }
 0x1b6   : > { %v6346_v47 = vadd.f32 %v6345_v32, %v6344_v12 }
 0x1b8   : > { %v2093_v41 = vadd.f32 %v6346_v47, %v1914_v44  ;;  %v6347_v17 = vpop.f32.mrb[22].mxu0 }
 0x1b9   : > { %v6348_v46 = vpop.f32.mrb[23].mxu0 }
 0x1ba   : > { %v6349_v51 = vadd.f32 %v6348_v46, %v6347_v17 }
 0x1bc   : > { %v2100_v39 = vadd.f32 %v6349_v51, %v1925_v28 }
 0x1bd   : > { %v6382_v38 = vpop.f32.mrb[20].mxu1 }
 0x1be   : > { %v6383_v61 = vpop.f32.mrb[21].mxu1 }
 0x1bf   : > { %v6384_v34 = vadd.f32 %v6383_v61, %v6382_v38 }
 0x1c1   : > { %v2204_v2 = vadd.f32 %v6384_v34, %v2093_v41  ;;  %v6385_v3 = vpop.f32.mrb[22].mxu1 }
 0x1c2   : > { %v6386_v58 = vpop.f32.mrb[23].mxu1 }
 0x1c3   : > { %v2221_v24 = vmul.f32 %v5922_v14, %v2204_v2  ;;  %v6387_v35 = vadd.f32 %v6386_v58, %v6385_v3 }
 0x1c5   : > { %v2230_v6 = vadd.f32 %v5923_v45, %v2221_v24  ;;  %v2211_v56 = vadd.f32 %v6387_v35, %v2100_v39 }
 0x1c7   : > { %v2232_v57 = vmax.f32 %v2230_v6, 0.0  ;;  %v2222_v15 = vmul.f32 %v5922_v14, %v2211_v56 }
 0x1c9   : > { %v2234_v60 = vmin.f32 %v2232_v57, 6.0  ;;  %v2231_v1 = vadd.f32 %v5923_v45, %v2222_v15 }
 0x1cb   : > { %v2233_v54 = vmax.f32 %v2231_v1, 0.0  ;;  %v2239_v52 = vsel %vm2237_vm0, %v2234_v60, 0 }
 0x1cc   : > { %v2310_v29 = vand.u32 4294901760, %v2239_v52 }
 0x1cd   : > { %v2235_v18 = vmin.f32 %v2233_v54, 6.0 }
 0x1ce   : > { %v2311_v11 = vsub.f32 %v2239_v52, %v2310_v29 }
 0x1cf   : > { %v2242_v31 = vsel %vm2237_vm0, %v2235_v18, 0 }
 0x1d0   : > { %v2320_v8 = vand.u32 4294901760, %v2242_v31  ;;  %v2312_v0 = vand.u32 4294901760, %v2311_v11 }
 0x1d2   : > { %v2321_v16 = vsub.f32 %v2242_v31, %v2320_v8  ;;  %6555 = vmatprep.mubr.f32.mxu0 %v2312_v0  ;;  %v2313_v48 = vsub.f32 %v2311_v11, %v2312_v0 }
 0x1d4   : > { %v2314_v27 = vand.u32 4294901760, %v2313_v48  ;;  %v2322_v53 = vand.u32 4294901760, %v2321_v16 }
 0x1d6   : > { %6540 = vmatprep.mubr.f32.mxu1 %v2314_v27  ;;  %6556 = vmatmul.mubr.f32.vlgmr.msra.gmra.mrb[24].mxu0 %v2322_v53  ;;  %v2323_v36 = vsub.f32 %v2321_v16, %v2322_v53 }
 0x1d7   : > { %6560 = vmatprep.mubr.f32.mxu0 %v2310_v29  ;;  %6559 = vmatpush3.msra.mxu0 %v8621_v5 }
 0x1d8   : > { %v2324_v59 = vand.u32 4294901760, %v2323_v36  ;;  %6563 = vmatprep.subr.mxu0 %v8611_v42 }
 0x1da   : > { %6541 = vmatmul.mubr.f32.vlgmr.msra.gmra.mrb[24].mxu1 %v2324_v59 }
 0x1db   : > { %6544 = vmatpush3.msra.mxu1 %v8626_v22  ;;  %6545 = vmatprep.mubr.f32.mxu1 %v2310_v29 }
 0x1dc   : > { %6548 = vmatprep.subr.mxu1 %v8618_v43 }
 0x1de   : > { %6561 = vmatmul.mubr.f32.vlgmr.msra.gmra.mrb[24].mxu0 %v2320_v8 }
 0x1df   : > { %6565 = vmatprep.mubr.f32.mxu0 %v2310_v29  ;;  %6564 = vmatpush3.msra.mxu0 %v8611_v42 }
 0x1e2   : > { %6546 = vmatmul.mubr.f32.vlgmr.msra.gmra.mrb[24].mxu1 %v2320_v8 }
 0x1e3   : > { %6549 = vmatpush3.msra.mxu1 %v8618_v43  ;;  %6550 = vmatprep.mubr.f32.mxu1 %v2311_v11 }
 0x1e6   : > { %6566 = vmatmul.mubr.f32.vlgmr.msra.gmra.mrb[24].mxu0 %v2320_v8 }
 0x1ea   : > { %6551 = vmatmul.mubr.f32.vlgmr.msra.gmra.mrb[24].mxu1 %v2321_v16 }
 0x2b9   : > { %v6567_v5 = vpop.f32.mrb[24].mxu0 }
 0x2ba   : > { %v2723_v55 = vpop.f32.mrb[25].mxu0 }
 0x2bd   : > { %v6552_v62 = vpop.f32.mrb[24].mxu1 }
 0x2be   : > { %v8641_v49 = vadd.f32 %v6567_v5, %v6552_v62  ;;  %v2482_v7 = vpop.f32.mrb[25].mxu1 }
 0x2bf   : > { %v8643_v22 = vadd.f32 %v2723_v55, %v2482_v7 }
 0x2c0   : > { %3799 = vrot.lane.b32.xlu1 %v8641_v49, %s7389_s30  ;;  %v2744_v33 = vsel %vm2741_vm1, %v8641_v49, 0 }
 0x2c1   : > { %2737 = vrot.lane.b32.xlu0 %v8643_v22, %s7390_s9  ;;  %v2742_v42 = vsel %vm2741_vm1, %v8643_v22, 0  ;;  %v8658_v20 = vand.u32 4294901760, %v2744_v33 }
 0x2c2   : > { %v8649_v43 = vand.u32 4294901760, %v2742_v42 }
 0x2c3   : > { %v2828_v4 = vsub.f32 %v2744_v33, %v8658_v20 }
 0x2c4   : > { %3797 = vrot.lane.b32.xlu1 %v8643_v22, %s7389_s30  ;;  %v2818_v9 = vsub.f32 %v2742_v42, %v8649_v43  ;;  %v2734_v42 = vld [vmem:[%s8736_s5 + $0x8] sm:$0xff] }
 0x2c5   : > { %2739 = vrot.lane.b32.xlu0 %v8641_v49, %s7390_s9  ;;  %v2829_v28 = vand.u32 4294901760, %v2828_v4 }
 0x2c6   : > { %v2819_v50 = vand.u32 4294901760, %v2818_v9 }
 0x2c7   : > { %v2830_v41 = vsub.f32 %v2828_v4, %v2829_v28 }
 0x2c8   : > { %3795 = vrot.lane.b32.xlu1 %v8641_v49, %s7391_s10  ;;  %v2820_v30 = vsub.f32 %v2818_v9, %v2819_v50 }
 0x2c9   : > { %3793 = vrot.lane.b32.xlu0 %v8643_v22, %s7391_s10  ;;  %v2831_v51 = vand.u32 4294901760, %v2830_v41  ;;  %s305_s10 = scalar_lea.vmem %s8739_s8, %s5931_s25 }
 0x2ca   : > { %v2821_v13 = vand.u32 4294901760, %v2820_v30 }
 0x2cc   : > { %6572 = vmatprep.mubr.f32.mxu1 %v2821_v13 }
 0x332   : > { %v3800_v61 = vpop.permute.xlu1 %3799 }
 0x333   : > { %v2738_v26 = vpop.permute.xlu0 %2737  ;;  %v3807_v45 = vsel %vm2741_vm1, %v3800_v61, 0 }
 0x334   : > { %v2746_v10 = vsel %vm2741_vm1, %v2738_v26, 0  ;;  %v3813_v35 = vand.u32 4294901760, %v3807_v45 }
 0x335   : > { %v2751_v37 = vand.u32 4294901760, %v2746_v10 }
 0x336   : > { %v3798_v34 = vpop.permute.xlu1 %3797  ;;  %v3905_v15 = vsub.f32 %v3807_v45, %v3813_v35 }
 0x337   : > { %v2839_v63 = vsub.f32 %v2746_v10, %v2751_v37  ;;  %v2740_v19 = vpop.permute.xlu0 %2739  ;;  %v3805_v2 = vsel %vm2741_vm1, %v3798_v34, 0 }
 0x338   : > { %v2748_v23 = vsel %vm2741_vm1, %v2740_v19, 0  ;;  %v3810_v58 = vand.u32 4294901760, %v3805_v2  ;;  %v3906_v52 = vand.u32 4294901760, %v3905_v15 }
 0x339   : > { %v2840_v44 = vand.u32 4294901760, %v2839_v63  ;;  %v2754_v25 = vand.u32 4294901760, %v2748_v23 }
 0x33a   : > { %v3898_v56 = vsub.f32 %v3805_v2, %v3810_v58  ;;  %v3796_v57 = vpop.permute.xlu1 %3795  ;;  %v7228_v11 = vpack.c.bf16 %v3813_v35, %v3810_v58  ;;  %v3907_v8 = vsub.f32 %v3905_v15, %v3906_v52 }
 0x33b   : > { %v7180_v21 = vpack.c.bf16 %v2754_v25, %v2751_v37  ;;  %v2846_v40 = vsub.f32 %v2748_v23, %v2754_v25  ;;  %v2841_v12 = vsub.f32 %v2839_v63, %v2840_v44  ;;  %v3794_v3 = vpop.permute.xlu0 %3793  ;;  %v3803_v60 = vsel %vm2741_vm1, %v3796_v57, 0  ;;  %v5925_v37 = vld [vmem:[%s8736_s5 + $0x18] sm:$0xff] }
 0x33c   : > { %v3801_v24 = vsel %vm2741_vm1, %v3794_v3, 0  ;;  %v3899_v54 = vand.u32 4294901760, %v3898_v56  ;;  %v3886_v29 = vand.u32 4294901760, %v3803_v60  ;;  %v3908_v53 = vand.u32 4294901760, %v3907_v8 }
 0x33d   : > { %v2847_v32 = vand.u32 4294901760, %v2846_v40  ;;  %7181 = vmatprep.subr.bf16.mxu1 %v7180_v21  ;;  %v2842_v17 = vand.u32 4294901760, %v2841_v12  ;;  %v7188_v38 = vpack.c.bf16 %v2846_v40, %v2839_v63  ;;  %v3876_v6 = vand.u32 4294901760, %v3801_v24 }
 0x33e   : > { %7183 = vmatpush3.bf16.xpose.msra.mxu1 %v7180_v21  ;;  %v3900_v31 = vsub.f32 %v3898_v56, %v3899_v54  ;;  %v3887_v0 = vsub.f32 %v3803_v60, %v3886_v29  ;;  %v7236_v62 = vpack.c.bf16 %v3905_v15, %v3898_v56  ;;  %v7244_v7 = vpack.c.bf16 %v3906_v52, %v3899_v54 }
 0x33f   : > { %v2848_v47 = vsub.f32 %v2846_v40, %v2847_v32  ;;  %v7196_v14 = vpack.c.bf16 %v2847_v32, %v2840_v44  ;;  %v3877_v1 = vsub.f32 %v3801_v24, %v3876_v6 }
 0x340   : > { %v3901_v48 = vand.u32 4294901760, %v3900_v31  ;;  %v3888_v27 = vand.u32 4294901760, %v3887_v0 }
 0x341   : > { %v2849_v46 = vand.u32 4294901760, %v2848_v47  ;;  %v3878_v18 = vand.u32 4294901760, %v3877_v1 }
 0x342   : > { %v7232_v59 = vpack.c.bf16 %v3908_v53, %v3901_v48  ;;  %v3889_v5 = vsub.f32 %v3887_v0, %v3888_v27 }
 0x343   : > { %v7184_v39 = vpack.c.bf16 %v2849_v46, %v2842_v17  ;;  %v3879_v16 = vsub.f32 %v3877_v1, %v3878_v18 }
 0x344   : > { %v3890_v55 = vand.u32 4294901760, %v3889_v5 }
 0x345   : > { %6573 = vmatmul.mubr.f32.vlgmr.msra.gmra.mrb[26].mxu1 %v2831_v51  ;;  %7185 = vmatprep.subr.bf16.mxu1 %v7184_v39  ;;  %v3880_v36 = vand.u32 4294901760, %v3879_v16 }
 0x346   : > { %7187 = vmatpush3.bf16.xpose.msra.mxu1 %v7184_v39  ;;  %6579 = vmatprep.mubr.f32.mxu1 %v8649_v43 }
 0x347   : > { %7189 = vmatprep.subr.bf16.mxu1 %v7188_v38 }
 0x34d   : > { %6580 = vmatmul.mubr.f32.vlgmr.msra.gmra.mrb[26].mxu1 %v8658_v20 }
 0x34e   : > { %7191 = vmatpush3.bf16.xpose.msra.mxu1 %v7188_v38  ;;  %6586 = vmatprep.mubr.f32.mxu1 %v2818_v9 }
 0x34f   : > { %7193 = vmatprep.subr.bf16.mxu1 %v7180_v21 }
 0x355   : > { %6587 = vmatmul.mubr.f32.vlgmr.msra.gmra.mrb[26].mxu1 %v2828_v4 }
 0x356   : > { %7195 = vmatpush3.bf16.xpose.msra.mxu1 %v7180_v21  ;;  %6593 = vmatprep.mubr.f32.mxu1 %v2819_v50 }
 0x357   : > { %7197 = vmatprep.subr.bf16.mxu1 %v7196_v14 }
 0x35d   : > { %6594 = vmatmul.mubr.f32.vlgmr.msra.gmra.mrb[26].mxu1 %v2829_v28 }
 0x35e   : > { %7199 = vmatpush3.bf16.xpose.msra.mxu1 %v7196_v14  ;;  %6600 = vmatprep.mubr.f32.mxu1 %v8649_v43 }
 0x35f   : > { %7201 = vmatprep.subr.bf16.mxu1 %v7180_v21 }
 0x365   : > { %6601 = vmatmul.mubr.f32.vlgmr.msra.gmra.mrb[26].mxu1 %v8658_v20 }
 0x366   : > { %7203 = vmatpush3.bf16.xpose.msra.mxu1 %v7180_v21  ;;  %6607 = vmatprep.mubr.f32.mxu1 %v8649_v43  ;;  %v2733_v43 = vld [vmem:[%s8736_s5] sm:$0xff] }
 0x367   : > { %7229 = vmatprep.subr.bf16.mxu1 %v7228_v11 }
 0x36d   : > { %6608 = vmatmul.mubr.f32.vlgmr.msra.gmra.mrb[26].mxu1 %v8658_v20  ;;  %v5924_v20 = vld [vmem:[%s8736_s5 + $0x10] sm:$0xff] }
 0x36e   : > { %7231 = vmatpush3.bf16.xpose.msra.mxu1 %v7228_v11  ;;  %6656 = vmatprep.mubr.f32.mxu1 %v3880_v36 }
 0x36f   : > { %7233 = vmatprep.subr.bf16.mxu1 %v7232_v59 }
 0x375   : > { %6657 = vmatmul.mubr.f32.vlgmr.msra.gmra.mrb[28].mxu1 %v3890_v55 }
 0x376   : > { %7235 = vmatpush3.bf16.xpose.msra.mxu1 %v7232_v59  ;;  %6663 = vmatprep.mubr.f32.mxu1 %v3876_v6 }
 0x377   : > { %7237 = vmatprep.subr.bf16.mxu1 %v7236_v62 }
 0x37d   : > { %6664 = vmatmul.mubr.f32.vlgmr.msra.gmra.mrb[28].mxu1 %v3886_v29 }
 0x37e   : > { %7239 = vmatpush3.bf16.xpose.msra.mxu1 %v7236_v62  ;;  %6670 = vmatprep.mubr.f32.mxu1 %v3877_v1 }
 0x37f   : > { %7241 = vmatprep.subr.bf16.mxu1 %v7228_v11 }
 0x385   : > { %6671 = vmatmul.mubr.f32.vlgmr.msra.gmra.mrb[28].mxu1 %v3887_v0 }
 0x386   : > { %7243 = vmatpush3.bf16.xpose.msra.mxu1 %v7228_v11  ;;  %6677 = vmatprep.mubr.f32.mxu1 %v3878_v18 }
 0x387   : > { %7245 = vmatprep.subr.bf16.mxu1 %v7244_v7 }
 0x38d   : > { %6678 = vmatmul.mubr.f32.vlgmr.msra.gmra.mrb[28].mxu1 %v3888_v27 }
 0x38e   : > { %7247 = vmatpush3.bf16.xpose.msra.mxu1 %v7244_v7  ;;  %6684 = vmatprep.mubr.f32.mxu1 %v3876_v6 }
 0x38f   : > { %7249 = vmatprep.subr.bf16.mxu1 %v7228_v11 }
 0x395   : > { %6685 = vmatmul.mubr.f32.vlgmr.msra.gmra.mrb[28].mxu1 %v3886_v29 }
 0x396   : > { %7251 = vmatpush3.bf16.xpose.msra.mxu1 %v7228_v11  ;;  %6691 = vmatprep.mubr.f32.mxu1 %v3876_v6 }
 0x39d   : > { %6692 = vmatmul.mubr.f32.vlgmr.msra.gmra.mrb[28].mxu1 %v3886_v29 }
 0x440   : > { %v6609_v9 = vpop.f32.mrb[26].mxu1 }
 0x441   : > { %v7278_v50 = vadd.f32 %v6609_v9, %v2734_v42  ;;  %v3242_v30 = vpop.f32.mrb[27].mxu1 }
 0x442   : > { %v7279_v13 = vadd.f32 %v3242_v30, %v2733_v43 }
 0x443   : > { %v3256_v33 = vsel %vm3252_vm2, %v7278_v50, -inf }
 0x444   : > { %3257 = vmax.xlane.f32.xlu1 %v3256_v33  ;;  %v3253_v26 = vsel %vm3252_vm2, %v7279_v13, -inf }
 0x445   : > { %3254 = vmax.xlane.f32.xlu0 %v3253_v26 }
 0x470   : > { %v6693_v10 = vpop.f32.mrb[28].mxu1 }
 0x471   : > { %v4301_v63 = vpop.f32.mrb[29].mxu1  ;;  %v7280_v4 = vadd.f32 %v6693_v10, %v5925_v37 }
 0x472   : > { %v7281_v19 = vadd.f32 %v5924_v20, %v4301_v63 }
 0x473   : > { %v4314_v44 = vsel %vm3252_vm2, %v7280_v4, -inf }
 0x474   : > { %v4311_v23 = vsel %vm3252_vm2, %v7281_v19, -inf }
 0x475   : > { %4312 = vmax.xlane.f32.xlu0 %v4311_v23 }
 0x479   : > { %4315 = vmax.xlane.f32.xlu0 %v4314_v44 }
 0x4d1   : > { %v3258_v25 = vpop.xlane.xlu1 %3257 }
 0x4d2   : > { %v3260_v21 = vsub.f32 %v7278_v50, %v3258_v25  ;;  %v3255_v40 = vpop.xlane.xlu0 %3254 }
 0x4d3   : > { %v3259_v28 = vsub.f32 %v7279_v13, %v3255_v40 }
 0x4d4   : > { %v3263_v12 = vmul.f32 1.442695, %v3260_v21 }
 0x4d5   : > { %v3261_v32 = vmul.f32 1.442695, %v3259_v28 }
 0x4d6   : > { %7365 = vpow2.f32 %v3263_v12 }
 0x4d7   : > { %7367 = vpow2.f32 %v3261_v32 }
 0x4e0   : > { %v7366_v47 = vpop.eup %7365 }
 0x4e1   : > { %v7368_v41 = vpop.eup %7367  ;;  %v3268_v17 = vsel %vm3252_vm2, %v7366_v47, 0.0 }
 0x4e2   : > { %3269 = vadd.xlane.f32.xlu0 %v3268_v17  ;;  %v3265_v46 = vsel %vm3252_vm2, %v7368_v41, 0.0 }
 0x4e3   : > { %3266 = vadd.xlane.f32.xlu1 %v3265_v46 }
 0x4f4   : > { %3275 = vrot.lane.b32.xlu1 %v8643_v22, %s7392_s20 }
 0x4f8   : > { %3277 = vrot.lane.b32.xlu0 %v8641_v49, %s7392_s20 }
 0x502   : > { %v4313_v51 = vpop.xlane.xlu0 %4312 }
 0x503   : > { %v4317_v39 = vsub.f32 %v7281_v19, %v4313_v51 }
 0x505   : > { %v4319_v38 = vmul.f32 1.442695, %v4317_v39 }
 0x506   : > { %v4316_v61 = vpop.xlane.xlu0 %4315 }
 0x507   : > { %v4318_v34 = vsub.f32 %v7280_v4, %v4316_v61  ;;  %7369 = vpow2.f32 %v4319_v38 }
 0x509   : > { %v4321_v14 = vmul.f32 1.442695, %v4318_v34 }
 0x50b   : > { %7371 = vpow2.f32 %v4321_v14 }
 0x511   : > { %v8693_v2 = vpop.eup %7369 }
 0x512   : > { %v4323_v58 = vsel %vm3252_vm2, %v8693_v2, 0.0 }
 0x515   : > { %v8695_v3 = vpop.eup %7371 }
 0x516   : > { %v4326_v45 = vsel %vm3252_vm2, %v8695_v3, 0.0 }
 0x517   : > { %4327 = vadd.xlane.f32.xlu0 %v4326_v45 }
 0x518   : > { %4324 = vadd.xlane.f32.xlu1 %v4323_v58 }
 0x529   : > { %4333 = vrot.lane.b32.xlu1 %v8643_v22, %s7393_s21 }
 0x52d   : > { %4335 = vrot.lane.b32.xlu0 %v8641_v49, %s7393_s21 }
 0x56f   : > { %v3270_v24 = vpop.xlane.xlu0 %3269 }
 0x570   : > { %7373 = vrcp.f32 %v3270_v24  ;;  %v3267_v35 = vpop.xlane.xlu1 %3266 }
 0x571   : > { %7375 = vrcp.f32 %v3267_v35 }
 0x573   : > { %v3278_v6 = vpop.permute.xlu0 %3277 }
 0x574   : > { %v3291_v56 = vand.u32 4294901760, %v3278_v6  ;;  %v3276_v57 = vpop.permute.xlu1 %3275 }
 0x575   : > { %v3288_v15 = vand.u32 4294901760, %v3276_v57 }
 0x576   : > { %v3383_v60 = vsub.f32 %v3278_v6, %v3291_v56 }
 0x577   : > { %v7204_v1 = vpack.c.bf16 %v3291_v56, %v3288_v15  ;;  %v3376_v54 = vsub.f32 %v3276_v57, %v3288_v15  ;;  %v5926_v57 = vld [vmem:[%s8737_s6 + $0x4] sm:$0xf] }
 0x578   : > { %v3384_v52 = vand.u32 4294901760, %v3383_v60  ;;  %v4857_v15 = vsel %vm4855_vm3, %v5926_v57, 0 }
 0x579   : > { %v3377_v29 = vand.u32 4294901760, %v3376_v54  ;;  %7205 = vmatprep.subr.bf16.mxu0 %v7204_v1  ;;  %v7212_v30 = vpack.c.bf16 %v3383_v60, %v3376_v54 }
 0x57a   : > { %v7374_v18 = vpop.eup %7373  ;;  %v3385_v11 = vsub.f32 %v3383_v60, %v3384_v52  ;;  %7207 = vmatpush3.bf16.msra.mxu0 %v7204_v1  ;;  %v4860_v60 = vand.u32 4294901760, %v4857_v15 }
 0x57b   : > { %v7376_v22 = vpop.eup %7375  ;;  %v3274_v31 = vmul.f32 %v7374_v18, %v7366_v47  ;;  %v3378_v49 = vsub.f32 %v3376_v54, %v3377_v29  ;;  %v7220_v13 = vpack.c.bf16 %v3384_v52, %v3377_v29 }
 0x57c   : > { %v3273_v8 = vmul.f32 %v7376_v22, %v7368_v41  ;;  %v3386_v0 = vand.u32 4294901760, %v3385_v11 }
 0x57d   : > { %v3379_v16 = vand.u32 4294901760, %v3378_v49  ;;  %v3285_v48 = vsel %vm3252_vm2, %v3274_v31, 0 }
 0x57e   : > { %v3282_v27 = vsel %vm3252_vm2, %v3273_v8, 0  ;;  %v3364_v53 = vand.u32 4294901760, %v3285_v48 }
 0x57f   : > { %v7208_v36 = vpack.c.bf16 %v3386_v0, %v3379_v16  ;;  %v3354_v59 = vand.u32 4294901760, %v3282_v27 }
 0x580   : > { %v3365_v5 = vsub.f32 %v3285_v48, %v3364_v53 }
 0x581   : > { %7209 = vmatprep.subr.bf16.mxu0 %v7208_v36  ;;  %v3355_v55 = vsub.f32 %v3282_v27, %v3354_v59 }
 0x582   : > { %v3366_v62 = vand.u32 4294901760, %v3365_v5 }
 0x583   : > { %v3356_v7 = vand.u32 4294901760, %v3355_v55 }
 0x584   : > { %v3367_v42 = vsub.f32 %v3365_v5, %v3366_v62 }
 0x585   : > { %v3357_v43 = vsub.f32 %v3355_v55, %v3356_v7 }
 0x586   : > { %v3368_v50 = vand.u32 4294901760, %v3367_v42 }
 0x587   : > { %v3358_v9 = vand.u32 4294901760, %v3357_v43 }
 0x589   : > { %6614 = vmatprep.mubr.f32.mxu0 %v3358_v9 }
 0x58a   : > { %6615 = vmatmul.mubr.f32.vlgmr.msra.gmra.mrb[26].mxu0 %v3368_v50 }
 0x58b   : > { %7211 = vmatpush3.bf16.msra.mxu0 %v7208_v36  ;;  %6621 = vmatprep.mubr.f32.mxu0 %v3354_v59 }
 0x58c   : > { %7213 = vmatprep.subr.bf16.mxu0 %v7212_v30 }
 0x592   : > { %6622 = vmatmul.mubr.f32.vlgmr.msra.gmra.mrb[26].mxu0 %v3364_v53 }
 0x593   : > { %7215 = vmatpush3.bf16.msra.mxu0 %v7212_v30  ;;  %6628 = vmatprep.mubr.f32.mxu0 %v3355_v55 }
 0x594   : > { %7217 = vmatprep.subr.bf16.mxu0 %v7204_v1 }
 0x59a   : > { %6629 = vmatmul.mubr.f32.vlgmr.msra.gmra.mrb[26].mxu0 %v3365_v5 }
 0x59b   : > { %7219 = vmatpush3.bf16.msra.mxu0 %v7204_v1  ;;  %6635 = vmatprep.mubr.f32.mxu0 %v3356_v7  ;;  %v3789_v7 = vld [vmem:[%s8737_s6] sm:$0xf] }
 0x59c   : > { %7221 = vmatprep.subr.bf16.mxu0 %v7220_v13  ;;  %v5355_v42 = vsel %vm4855_vm3, %v3789_v7, 0 }
 0x59d   : > { %v5358_v9 = vand.u32 4294901760, %v5355_v42 }
 0x59f   : > { %v5445_v30 = vsub.f32 %v5355_v42, %v5358_v9 }
 0x5a2   : > { %6636 = vmatmul.mubr.f32.vlgmr.msra.gmra.mrb[26].mxu0 %v3366_v62 }
 0x5a3   : > { %7223 = vmatpush3.bf16.msra.mxu0 %v7220_v13  ;;  %6642 = vmatprep.mubr.f32.mxu0 %v3354_v59 }
 0x5a4   : > { %7225 = vmatprep.subr.bf16.mxu0 %v7204_v1  ;;  %v4328_v33 = vpop.xlane.xlu0 %4327 }
 0x5a5   : > { %7377 = vrcp.f32 %v4328_v33  ;;  %v4325_v26 = vpop.xlane.xlu1 %4324 }
 0x5a6   : > { %7379 = vrcp.f32 %v4325_v26 }
 0x5a8   : > { %v4336_v20 = vpop.permute.xlu0 %4335 }
 0x5a9   : > { %v4349_v10 = vand.u32 4294901760, %v4336_v20  ;;  %v4334_v37 = vpop.permute.xlu1 %4333 }
 0x5aa   : > { %v4346_v63 = vand.u32 4294901760, %v4334_v37  ;;  %6643 = vmatmul.mubr.f32.vlgmr.msra.gmra.mrb[26].mxu0 %v3364_v53 }
 0x5ab   : > { %v4441_v19 = vsub.f32 %v4336_v20, %v4349_v10  ;;  %7227 = vmatpush3.bf16.msra.mxu0 %v7204_v1  ;;  %6649 = vmatprep.mubr.f32.mxu0 %v3354_v59  ;;  %v4947_v1 = vsub.f32 %v4857_v15, %v4860_v60  ;;  %v5446_v20 = vand.u32 4294901760, %v5445_v30 }
 0x5ac   : > { %v7252_v4 = vpack.c.bf16 %v4349_v10, %v4346_v63  ;;  %v4434_v23 = vsub.f32 %v4334_v37, %v4346_v63 }
 0x5ad   : > { %v4442_v44 = vand.u32 4294901760, %v4441_v19  ;;  %v4948_v54 = vand.u32 4294901760, %v4947_v1  ;;  %v5447_v63 = vsub.f32 %v5445_v30, %v5446_v20 }
 0x5ae   : > { %v4435_v25 = vand.u32 4294901760, %v4434_v23  ;;  %7253 = vmatprep.subr.bf16.mxu0 %v7252_v4  ;;  %v7260_v6 = vpack.c.bf16 %v4441_v19, %v4434_v23 }
 0x5af   : > { %v7378_v21 = vpop.eup %7377  ;;  %v4443_v40 = vsub.f32 %v4441_v19, %v4442_v44  ;;  %v4949_v52 = vsub.f32 %v4947_v1, %v4948_v54 }
 0x5b0   : > { %v7380_v28 = vpop.eup %7379  ;;  %v4332_v12 = vmul.f32 %v7378_v21, %v8695_v3  ;;  %v4436_v32 = vsub.f32 %v4434_v23, %v4435_v25  ;;  %v7268_v56 = vpack.c.bf16 %v4442_v44, %v4435_v25  ;;  %v5448_v23 = vand.u32 4294901760, %v5447_v63 }
 0x5b1   : > { %v4331_v47 = vmul.f32 %v7380_v28, %v8693_v2  ;;  %v4444_v41 = vand.u32 4294901760, %v4443_v40  ;;  %v4950_v29 = vand.u32 4294901760, %v4949_v52  ;;  %v5927_v40 = vld [vmem:[%s8738_s7] ss:$0 sm:$0xff] }
 0x5b2   : > { %v4437_v17 = vand.u32 4294901760, %v4436_v32  ;;  %6650 = vmatmul.mubr.f32.vlgmr.msra.gmra.mrb[26].mxu0 %v3364_v53  ;;  %v4343_v46 = vsel %vm3252_vm2, %v4332_v12, 0 }
 0x5b3   : > { %7255 = vmatpush3.bf16.msra.mxu0 %v7252_v4  ;;  %v4340_v51 = vsel %vm3252_vm2, %v4331_v47, 0  ;;  %v4422_v39 = vand.u32 4294901760, %v4343_v46 }
 0x5b4   : > { %v7256_v38 = vpack.c.bf16 %v4444_v41, %v4437_v17  ;;  %v4412_v61 = vand.u32 4294901760, %v4340_v51 }
 0x5b5   : > { %v4423_v34 = vsub.f32 %v4343_v46, %v4422_v39 }
 0x5b6   : > { %7257 = vmatprep.subr.bf16.mxu0 %v7256_v38  ;;  %v4413_v14 = vsub.f32 %v4340_v51, %v4412_v61 }
 0x5b7   : > { %v4424_v45 = vand.u32 4294901760, %v4423_v34 }
 0x5b8   : > { %v4414_v58 = vand.u32 4294901760, %v4413_v14 }
 0x5b9   : > { %v4425_v3 = vsub.f32 %v4423_v34, %v4424_v45 }
 0x5ba   : > { %v4415_v24 = vsub.f32 %v4413_v14, %v4414_v58 }
 0x5bb   : > { %v4426_v2 = vand.u32 4294901760, %v4425_v3 }
 0x5bc   : > { %v4416_v35 = vand.u32 4294901760, %v4415_v24 }
 0x5be   : > { %6698 = vmatprep.mubr.f32.mxu0 %v4416_v35 }
 0x5bf   : > { %6699 = vmatmul.mubr.f32.vlgmr.msra.gmra.mrb[28].mxu0 %v4426_v2 }
 0x5c0   : > { %7259 = vmatpush3.bf16.msra.mxu0 %v7256_v38  ;;  %6705 = vmatprep.mubr.f32.mxu0 %v4412_v61 }
 0x5c1   : > { %7261 = vmatprep.subr.bf16.mxu0 %v7260_v6 }
 0x5c7   : > { %6706 = vmatmul.mubr.f32.vlgmr.msra.gmra.mrb[28].mxu0 %v4422_v39 }
 0x5c8   : > { %7263 = vmatpush3.bf16.msra.mxu0 %v7260_v6  ;;  %6712 = vmatprep.mubr.f32.mxu0 %v4413_v14 }
 0x5c9   : > { %7265 = vmatprep.subr.bf16.mxu0 %v7252_v4 }
 0x5cf   : > { %6713 = vmatmul.mubr.f32.vlgmr.msra.gmra.mrb[28].mxu0 %v4423_v34 }
 0x5d0   : > { %7267 = vmatpush3.bf16.msra.mxu0 %v7252_v4  ;;  %6719 = vmatprep.mubr.f32.mxu0 %v4414_v58 }
 0x5d1   : > { %7269 = vmatprep.subr.bf16.mxu0 %v7268_v56 }
 0x5d7   : > { %6720 = vmatmul.mubr.f32.vlgmr.msra.gmra.mrb[28].mxu0 %v4424_v45 }
 0x5d8   : > { %7271 = vmatpush3.bf16.msra.mxu0 %v7268_v56  ;;  %6726 = vmatprep.mubr.f32.mxu0 %v4412_v61 }
 0x5d9   : > { %7273 = vmatprep.subr.bf16.mxu0 %v7252_v4 }
 0x5df   : > { %6727 = vmatmul.mubr.f32.vlgmr.msra.gmra.mrb[28].mxu0 %v4422_v39 }
 0x5e0   : > { %7275 = vmatpush3.bf16.msra.mxu0 %v7252_v4  ;;  %6733 = vmatprep.mubr.f32.mxu0 %v4412_v61 }
 0x5e1   : > { %6736 = vmatprep.subr.mxu0 %v4860_v60 }
 0x5e7   : > { %6734 = vmatmul.mubr.f32.vlgmr.msra.gmra.mrb[28].mxu0 %v4422_v39 }
 0x5e8   : > { %6737 = vmatpush3.msra.mxu0 %v4860_v60 }
 0x5e9   : > { %6741 = vmatprep.subr.mxu0 %v4950_v29 }
 0x685   : > { %v6651_v18 = vpop.f32.mrb[26].mxu0 }
 0x686   : > { %v3779_v11 = vpop.f32.mrb[27].mxu0  ;;  %v5352_v13 = vsel %vm2741_vm1, %v6651_v18, 0 }
 0x687   : > { %v5349_v43 = vsel %vm2741_vm1, %v3779_v11, 0  ;;  %v5433_v26 = vand.u32 4294901760, %v5352_v13 }
 0x688   : > { %v5423_v50 = vand.u32 4294901760, %v5349_v43 }
 0x689   : > { %v5434_v37 = vsub.f32 %v5352_v13, %v5433_v26 }
 0x68a   : > { %v5424_v33 = vsub.f32 %v5349_v43, %v5423_v50 }
 0x68b   : > { %v5435_v4 = vand.u32 4294901760, %v5434_v37 }
 0x68c   : > { %v5425_v10 = vand.u32 4294901760, %v5424_v33 }
 0x68d   : > { %v5436_v25 = vsub.f32 %v5434_v37, %v5435_v4 }
 0x68e   : > { %v5426_v19 = vsub.f32 %v5424_v33, %v5425_v10 }
 0x68f   : > { %v5437_v21 = vand.u32 4294901760, %v5436_v25 }
 0x690   : > { %v5427_v44 = vand.u32 4294901760, %v5426_v19 }
 0x6ba   : > { %v6735_v22 = vpop.f32.mrb[28].mxu0 }
 0x6bb   : > { %v4853_v31 = vsel %vm2741_vm1, %v6735_v22, 0  ;;  %v4837_v49 = vpop.f32.mrb[29].mxu0 }
 0x6bc   : > { %v4935_v8 = vand.u32 4294901760, %v4853_v31  ;;  %v4850_v0 = vsel %vm2741_vm1, %v4837_v49, 0 }
 0x6bd   : > { %v4925_v16 = vand.u32 4294901760, %v4850_v0 }
 0x6be   : > { %v4936_v48 = vsub.f32 %v4853_v31, %v4935_v8 }
 0x6bf   : > { %v4926_v27 = vsub.f32 %v4850_v0, %v4925_v16 }
 0x6c0   : > { %v4937_v53 = vand.u32 4294901760, %v4936_v48 }
 0x6c1   : > { %v4927_v36 = vand.u32 4294901760, %v4926_v27 }
 0x6c2   : > { %v4938_v59 = vsub.f32 %v4936_v48, %v4937_v53 }
 0x6c3   : > { %v4928_v5 = vsub.f32 %v4926_v27, %v4927_v36 }
 0x6c4   : > { %v4939_v62 = vand.u32 4294901760, %v4938_v59 }
 0x6c5   : > { %v4929_v55 = vand.u32 4294901760, %v4928_v5 }
 0x6c7   : > { %6738 = vmatprep.mubr.f32.mxu0 %v4929_v55 }
 0x6c8   : > { %6739 = vmatmul.mubr.f32.vlgmr.msra.gmra.mrb[30].mxu0 %v4939_v62 }
 0x6c9   : > { %6742 = vmatpush3.msra.mxu0 %v4950_v29  ;;  %6743 = vmatprep.mubr.f32.mxu0 %v4925_v16 }
 0x6ca   : > { %6746 = vmatprep.subr.mxu0 %v4947_v1 }
 0x6d0   : > { %6744 = vmatmul.mubr.f32.vlgmr.msra.gmra.mrb[30].mxu0 %v4935_v8 }
 0x6d1   : > { %6747 = vmatpush3.msra.mxu0 %v4947_v1  ;;  %6748 = vmatprep.mubr.f32.mxu0 %v4926_v27 }
 0x6d2   : > { %6751 = vmatprep.subr.mxu0 %v4860_v60 }
 0x6d8   : > { %6749 = vmatmul.mubr.f32.vlgmr.msra.gmra.mrb[30].mxu0 %v4936_v48 }
 0x6d9   : > { %6752 = vmatpush3.msra.mxu0 %v4860_v60  ;;  %6753 = vmatprep.mubr.f32.mxu0 %v4927_v36 }
 0x6da   : > { %6756 = vmatprep.subr.mxu0 %v4948_v54 }
 0x6e0   : > { %6754 = vmatmul.mubr.f32.vlgmr.msra.gmra.mrb[30].mxu0 %v4937_v53 }
 0x6e1   : > { %6757 = vmatpush3.msra.mxu0 %v4948_v54  ;;  %6758 = vmatprep.mubr.f32.mxu0 %v4925_v16 }
 0x6e2   : > { %6761 = vmatprep.subr.mxu0 %v4860_v60 }
 0x6e8   : > { %6759 = vmatmul.mubr.f32.vlgmr.msra.gmra.mrb[30].mxu0 %v4935_v8 }
 0x6e9   : > { %6762 = vmatpush3.msra.mxu0 %v4860_v60  ;;  %6763 = vmatprep.mubr.f32.mxu0 %v4925_v16 }
 0x6ea   : > { %6766 = vmatprep.subr.mxu0 %v5358_v9 }
 0x6f0   : > { %6764 = vmatmul.mubr.f32.vlgmr.msra.gmra.mrb[30].mxu0 %v4935_v8 }
 0x6f1   : > { %6767 = vmatpush3.msra.mxu0 %v5358_v9  ;;  %6768 = vmatprep.mubr.f32.mxu0 %v5427_v44 }
 0x6f2   : > { %6771 = vmatprep.subr.mxu0 %v5448_v23 }
 0x6f8   : > { %6769 = vmatmul.mubr.f32.vlgmr.msra.gmra.mrb[30].mxu0 %v5437_v21 }
 0x6f9   : > { %6772 = vmatpush3.msra.mxu0 %v5448_v23  ;;  %6773 = vmatprep.mubr.f32.mxu0 %v5423_v50 }
 0x6fa   : > { %6776 = vmatprep.subr.mxu0 %v5445_v30 }
 0x700   : > { %6774 = vmatmul.mubr.f32.vlgmr.msra.gmra.mrb[30].mxu0 %v5433_v26 }
 0x701   : > { %6777 = vmatpush3.msra.mxu0 %v5445_v30  ;;  %6778 = vmatprep.mubr.f32.mxu0 %v5424_v33 }
 0x702   : > { %6781 = vmatprep.subr.mxu0 %v5358_v9 }
 0x708   : > { %6779 = vmatmul.mubr.f32.vlgmr.msra.gmra.mrb[30].mxu0 %v5434_v37 }
 0x709   : > { %6782 = vmatpush3.msra.mxu0 %v5358_v9  ;;  %6783 = vmatprep.mubr.f32.mxu0 %v5425_v10 }
 0x70a   : > { %6786 = vmatprep.subr.mxu0 %v5446_v20 }
 0x710   : > { %6784 = vmatmul.mubr.f32.vlgmr.msra.gmra.mrb[30].mxu0 %v5435_v4 }
 0x711   : > { %6787 = vmatpush3.msra.mxu0 %v5446_v20  ;;  %6788 = vmatprep.mubr.f32.mxu0 %v5423_v50 }
 0x712   : > { %6791 = vmatprep.subr.mxu0 %v5358_v9 }
 0x718   : > { %6789 = vmatmul.mubr.f32.vlgmr.msra.gmra.mrb[30].mxu0 %v5433_v26 }
 0x719   : > { %6792 = vmatpush3.msra.mxu0 %v5358_v9  ;;  %6793 = vmatprep.mubr.f32.mxu0 %v5423_v50 }
 0x720   : > { %6794 = vmatmul.mubr.f32.vlgmr.msra.gmra.mrb[30].mxu0 %v5433_v26 }
 0x7f3   : > { %v6795_v28 = vpop.f32.mrb[30].mxu0 }
 0x7f4   : > { %v5854_v12 = vadd.f32 %v6795_v28, %v5927_v40  ;;  %v5836_v32 = vpop.f32.mrb[31].mxu0 }
 0x7f5   : > { %v5853_v47 = vadd.f32 %v5927_v40, %v5836_v32 }
 0x7f6   : > { %5857 = vst.msk [vmem:[%s305_s10 + $0x8] sm:$0xff] %vm5855_vm4, %v5854_v12 }
 0x7f7   : > { %5856 = vst.msk [vmem:[%s305_s10] sm:$0xff] %vm5855_vm4, %v5853_v47 }
 0x7f8 PF: > { %s18_s27 = sadd.s32 1, %s7387_s27  }
 0x7f9   : > { %p15_p4 = scmp.ge.s32.totalorder %s18_s27, 4  }
 0x7fb   :  { %17 = sbr.rel (!%p15_p4) target bundleno = 1 (0x1), region = 84 }

</bundles_post_ra>
